<compile_context>
chip_gen: v6e
topology: v6e:2x2x1
jax: 0.10.0
libtpu: 0.0.40
codegen_flags: <defaults>
</compile_context>

<pallas_src>
import functools

import jax
import jax.numpy as jnp
from jax import lax
from jax.experimental import pallas as pl
from jax.experimental.pallas import tpu as pltpu


def _round_up(v, m):
    return ((v + m - 1) // m) * m


def _tpu_tile_m_and_vmem_cap():
    """TM = MXU row count of this generation; VMEM cap leaves headroom."""
    tm, cap = 256, 100 << 20            # v6e default (128 MiB physical VMEM)
    try:
        kind = jax.devices()[0].device_kind.lower()
        if "v5" in kind and ("lite" in kind or "v5e" in kind):
            tm = 128                    # v5e MXU is 4x128x128
        if "v7" in kind:
            cap = 56 << 20              # v7x: 64 MiB per TensorCore
    except Exception:
        pass
    return tm, cap


# ----------------------------------------------------------------------------
# Fused X-update kernel (one TM-row tile of the folded (B*depth) dimension)
# ----------------------------------------------------------------------------
def _x_update_kernel(rho_ref, sino_ref, x_ref, zeta_ref, beta_ref, sys_ref,
                     x_out_ref, *, num_its, use_bf16_matmul):
    # rho_ref  : (1,)           SMEM, already clamped to [0.98, 1.02]
    # sino_ref : (TM, Pp)       VMEM
    # x/zeta/beta : (TM, Np)    VMEM
    # sys_ref  : (Pp, Np)       VMEM, whole-array resident (single buffer)
    A = rho_ref[0]
    sino = sino_ref[...]                     # (TM, Pp)
    x = x_ref[...]                           # (TM, Np)
    sysm = sys_ref[...]                      # (Pp, Np)
    sysm_mm = sysm.astype(jnp.bfloat16) if use_bf16_matmul else sysm

    # Loop-invariant terms of the quadratic solve (hoisted out of num_its loop).
    Bq = A * beta_ref[...] + A * zeta_ref[...] - 1.0
    neg_Bq = -Bq
    Bq2 = Bq * Bq
    four_A = 4.0 * A
    inv_2A = 0.5 / A                          # scalar reciprocal, computed once

    # num_its is small & static -> unrolled Python loop (full LLO visibility).
    for _ in range(num_its):
        x_mm = x.astype(jnp.bfloat16) if use_bf16_matmul else x
        # fp_system: x @ sys_mat.T  (contraction expressed directly, no transposed copy)
        fp = lax.dot_general(x_mm, sysm_mm, (((1,), (1,)), ((), ())),
                             preferred_element_type=jnp.float32)          # (TM, Pp)
        # TODO(synk): Sino_modify_net undefined in source -> sino unchanged.
        denom = fp + 1e-9
        # EUP approx reciprocal + one Newton step (~f32-exact) instead of a VALU divide.
        r = pl.reciprocal(denom, approx=True)
        r = r * (2.0 - denom * r)
        sino_dom = sino * r
        sd_mm = sino_dom.astype(jnp.bfloat16) if use_bf16_matmul else sino_dom
        # bp_system: sino_dom @ sys_mat
        corr = jnp.dot(sd_mm, sysm_mm,
                       preferred_element_type=jnp.float32)                # (TM, Np)
        disc = jnp.sqrt(jnp.maximum(Bq2 + four_A * (x * corr), 0.0))
        x = (neg_Bq + disc) * inv_2A

    x_out_ref[...] = x


# ----------------------------------------------------------------------------
# Wrapper: layout plumbing (fold B*depth, pad to lane/sublane multiples) + call
# ----------------------------------------------------------------------------
def x_update_forward(sino, gt_sin, sys_mat, x, zeta, beta, rho,
                     *, nxd, nrd, nphi, num_its, depth=5,
                     tile_m=None, use_bf16_matmul=False):
    B = sino.shape[0]
    P = nphi * nrd
    N = nxd * nxd
    M = B * depth

    auto_tm, vmem_cap = _tpu_tile_m_and_vmem_cap()
    if tile_m is None:
        tile_m = auto_tm

    P_pad = _round_up(P, 128)                 # lane-dense sinogram dimension
    N_pad = _round_up(N, 128)                 # lane-dense image dimension
    TM = min(tile_m, _round_up(M, 8))         # sublane-aligned row tile
    M_pad = _round_up(M, TM)
    n_tiles = M_pad // TM

    def pad2(a, rows, cols):
        return jnp.pad(a, ((0, rows - a.shape[0]), (0, cols - a.shape[1])))

    sino_f = pad2(sino.astype(jnp.float32).reshape(M, P), M_pad, P_pad)
    x_f = pad2(x.astype(jnp.float32).reshape(M, N), M_pad, N_pad)
    z_f = pad2(zeta.astype(jnp.float32).reshape(M, N), M_pad, N_pad)
    b_f = pad2(beta.astype(jnp.float32).reshape(M, N), M_pad, N_pad)
    sys_f = pad2(sys_mat.astype(jnp.float32), P_pad, N_pad)
    rho_c = jnp.clip(rho.astype(jnp.float32).reshape(1), 0.98, 1.02)

    kernel = functools.partial(_x_update_kernel, num_its=num_its,
                               use_bf16_matmul=use_bf16_matmul)

    img_spec = pl.BlockSpec((TM, N_pad), lambda i: (i, 0))
    sin_spec = pl.BlockSpec((TM, P_pad), lambda i: (i, 0))

    # Explicit VMEM budget: resident sys_mat + double-buffered per-tile operands.
    tile_img_bytes = TM * N_pad * 4
    tile_sin_bytes = TM * P_pad * 4
    sys_bytes = P_pad * N_pad * 4
    need = sys_bytes + 2 * (tile_sin_bytes + 3 * tile_img_bytes) + 2 * tile_img_bytes
    vmem_limit = int(min(vmem_cap, max(32 << 20, need + (4 << 20))))

    x_out = pl.pallas_call(
        kernel,
        out_shape=jax.ShapeDtypeStruct((M_pad, N_pad), jnp.float32),
        grid=(n_tiles,),
        in_specs=[
            pl.BlockSpec(memory_space=pltpu.MemorySpace.SMEM),    # rho (scalar)
            sin_spec,                                             # sino
            img_spec,                                             # x
            img_spec,                                             # zeta
            img_spec,                                             # beta
            pl.BlockSpec(memory_space=pltpu.MemorySpace.VMEM),    # sys_mat (whole, 1 buffer)
        ],
        out_specs=img_spec,
        compiler_params=pltpu.CompilerParams(
            dimension_semantics=("parallel",),
            vmem_limit_bytes=vmem_limit),
    )(rho_c, sino_f, x_f, z_f, b_f, sys_f)

    x_new = x_out[:M, :N].reshape(B, 1, depth, nxd, nxd)
    # Loss is independent of the iteration loop -> plain XLA op (no kernel traffic).
    loss = (gt_sin.astype(jnp.float32) - sino.astype(jnp.float32)
            ).reshape(B, 1, depth, nphi, nrd)
    return x_new, loss


# ----------------------------------------------------------------------------
# Pure-JAX reference (matches the PyTorch module semantics) for validation
# ----------------------------------------------------------------------------
def x_update_reference(sino, gt_sin, sys_mat, x, zeta, beta, rho,
                       *, nxd, nrd, nphi, num_its, depth=5):
    B = sino.shape[0]
    P = nphi * nrd
    N = nxd * nxd
    A = jnp.clip(rho.astype(jnp.float32), 0.98, 1.02).reshape(())
    xf = x.astype(jnp.float32).reshape(B * depth, N)
    sf = sino.astype(jnp.float32).reshape(B * depth, P)
    zf = zeta.astype(jnp.float32).reshape(B * depth, N)
    bf = beta.astype(jnp.float32).reshape(B * depth, N)
    sm = sys_mat.astype(jnp.float32)
    Bq = A * bf + A * zf - 1.0
    for _ in range(num_its):
        fp = jnp.dot(xf, sm.T, precision=lax.Precision.HIGHEST) + 1e-9
        sino_dom = sf / fp
        corr = jnp.dot(sino_dom, sm, precision=lax.Precision.HIGHEST)
        Cq = xf * corr
        disc = jnp.sqrt(jnp.maximum(Bq * Bq + 4.0 * A * Cq, 0.0))
        xf = (-Bq + disc) / (2.0 * A)
    loss = (gt_sin.astype(jnp.float32) - sino.astype(jnp.float32)
            ).reshape(B, 1, depth, nphi, nrd)
    return xf.reshape(B, 1, depth, nxd, nxd), loss


# ----------------------------------------------------------------------------
if __name__ == "__main__":
    nxd, nrd, nphi = 16, 16, 12
    depth = 5
    num_its = 3
    B = 2

    key = jax.random.PRNGKey(0)
    k_sino, k_gt, k_sys, k_x, k_z, k_b = jax.random.split(key, 6)

    sino = jax.random.uniform(k_sino, (B, 1, depth, nphi, nrd), jnp.float32)
    gt_sin = jax.random.uniform(k_gt, (B, 1, depth, nphi, nrd), jnp.float32)
    sys_mat = jax.random.uniform(k_sys, (nphi * nrd, nxd * nxd), jnp.float32) * 0.01
    x0 = jax.random.uniform(k_x, (B, 1, depth, nxd, nxd), jnp.float32)
    zeta = jax.random.uniform(k_z, (B, 1, depth, nxd, nxd), jnp.float32)
    beta = jax.random.uniform(k_b, (B, 1, depth, nxd, nxd), jnp.float32)
    rho = jnp.array([1.0], jnp.float32)

    fwd = jax.jit(functools.partial(x_update_forward,
                                    nxd=nxd, nrd=nrd, nphi=nphi,
                                    num_its=num_its, depth=depth))

    x_new, sino_loss = fwd(sino, gt_sin, sys_mat, x0, zeta, beta, rho)
    jax.block_until_ready(x_new)
    jax.block_until_ready(sino_loss)

    assert x_new.shape == (B, 1, depth, nxd, nxd)
    assert sino_loss.shape == (B, 1, depth, nphi, nrd)

    # Correctness check against the pure-JAX reference.
    x_ref, loss_ref = x_update_reference(sino, gt_sin, sys_mat, x0, zeta, beta, rho,
                                         nxd=nxd, nrd=nrd, nphi=nphi,
                                         num_its=num_its, depth=depth)
    err_x = float(jnp.max(jnp.abs(x_new - x_ref)))
    err_l = float(jnp.max(jnp.abs(sino_loss - loss_ref)))
    assert err_x < 5e-3, f"x mismatch: {err_x}"
    assert err_l < 5e-3, f"loss mismatch: {err_l}"

    print("KERNEL_OK")
</pallas_src>

<mosaic_0001>
module attributes {stable_mosaic.version = 11 : i64} {
  func.func @_x_update_kernel(%arg0: i32, %arg1: memref<1xf32, #tpu.memory_space<smem>>, %arg2: memref<16x256xf32, #tpu.memory_space<vmem>>, %arg3: memref<16x256xf32, #tpu.memory_space<vmem>>, %arg4: memref<16x256xf32, #tpu.memory_space<vmem>>, %arg5: memref<16x256xf32, #tpu.memory_space<vmem>>, %arg6: memref<256x256xf32, #tpu.memory_space<vmem>>, %arg7: memref<16x256xf32, #tpu.memory_space<vmem>>) attributes {dimension_semantics = [#tpu.dimension_semantics<parallel>], iteration_bounds = array<i64: 1>, scalar_prefetch = 0 : i64, scratch_operands = 0 : i64, tpu.core_type = #tpu.core_type<tc>, window_params = [{transform_indices = @transform_0, window_bounds = array<i64: 1>}, {transform_indices = @transform_1, window_bounds = array<i64: 16, 256>}, {transform_indices = @transform_2, window_bounds = array<i64: 16, 256>}, {transform_indices = @transform_3, window_bounds = array<i64: 16, 256>}, {transform_indices = @transform_4, window_bounds = array<i64: 16, 256>}, {pipeline_mode = #tpu.pipeline_mode<synchronous>, transform_indices = @transform_5, window_bounds = array<i64: 256, 256>}, {transform_indices = @transform_6, window_bounds = array<i64: 16, 256>}]} {
    %c0 = arith.constant 0 : index
    %0 = memref.load %arg1[%c0] : memref<1xf32, #tpu.memory_space<smem>>
    %c0_0 = arith.constant 0 : index
    %c0_1 = arith.constant 0 : index
    %1 = vector.load %arg2[%c0_0, %c0_1] : memref<16x256xf32, #tpu.memory_space<vmem>>, vector<16x256xf32>
    %c0_2 = arith.constant 0 : index
    %c0_3 = arith.constant 0 : index
    %2 = vector.load %arg3[%c0_2, %c0_3] : memref<16x256xf32, #tpu.memory_space<vmem>>, vector<16x256xf32>
    %c0_4 = arith.constant 0 : index
    %c0_5 = arith.constant 0 : index
    %3 = vector.load %arg6[%c0_4, %c0_5] : memref<256x256xf32, #tpu.memory_space<vmem>>, vector<256x256xf32>
    %c0_6 = arith.constant 0 : index
    %c0_7 = arith.constant 0 : index
    %4 = vector.load %arg5[%c0_6, %c0_7] : memref<16x256xf32, #tpu.memory_space<vmem>>, vector<16x256xf32>
    %5 = vector.broadcast %0 : f32 to vector<16x256xf32>
    %6 = arith.mulf %5, %4 : vector<16x256xf32>
    %c0_8 = arith.constant 0 : index
    %c0_9 = arith.constant 0 : index
    %7 = vector.load %arg4[%c0_8, %c0_9] : memref<16x256xf32, #tpu.memory_space<vmem>>, vector<16x256xf32>
    %8 = vector.broadcast %0 : f32 to vector<16x256xf32>
    %9 = arith.mulf %8, %7 : vector<16x256xf32>
    %10 = arith.addf %6, %9 : vector<16x256xf32>
    %cst = arith.constant 1.000000e+00 : f32
    %11 = vector.broadcast %cst : f32 to vector<16x256xf32>
    %12 = arith.subf %10, %11 : vector<16x256xf32>
    %cst_10 = arith.constant 0.000000e+00 : f32
    %13 = vector.broadcast %cst_10 : f32 to vector<16x256xf32>
    %14 = arith.subf %13, %12 : vector<16x256xf32>
    %15 = arith.mulf %12, %12 : vector<16x256xf32>
    %cst_11 = arith.constant 4.000000e+00 : f32
    %16 = arith.mulf %cst_11, %0 : f32
    %cst_12 = arith.constant 5.000000e-01 : f32
    %17 = arith.divf %cst_12, %0 : f32
    %cst_13 = arith.constant dense<0.000000e+00> : vector<16x256xf32>
    %18 = tpu.matmul %2, %3, %cst_13 {dimension_numbers = #tpu.dot_dimension_numbers<[1], [1], [0], [0], [0, 0, 1, 0], [], []>} : vector<16x256xf32>, vector<256x256xf32>, vector<16x256xf32> -> vector<16x256xf32>
    %cst_14 = arith.constant 9.99999971E-10 : f32
    %19 = vector.broadcast %cst_14 : f32 to vector<16x256xf32>
    %20 = arith.addf %18, %19 : vector<16x256xf32>
    %21 = tpu.reciprocal %20 {approx = true} : vector<16x256xf32> -> vector<16x256xf32>
    %22 = arith.mulf %20, %21 : vector<16x256xf32>
    %cst_15 = arith.constant 2.000000e+00 : f32
    %23 = vector.broadcast %cst_15 : f32 to vector<16x256xf32>
    %24 = arith.subf %23, %22 : vector<16x256xf32>
    %25 = arith.mulf %21, %24 : vector<16x256xf32>
    %26 = arith.mulf %1, %25 : vector<16x256xf32>
    %cst_16 = arith.constant dense<0.000000e+00> : vector<16x256xf32>
    %27 = tpu.matmul %26, %3, %cst_16 {dimension_numbers = #tpu.dot_dimension_numbers<[1], [0], [0], [1], [0, 0, 1, 1], [], []>} : vector<16x256xf32>, vector<256x256xf32>, vector<16x256xf32> -> vector<16x256xf32>
    %28 = arith.mulf %2, %27 : vector<16x256xf32>
    %29 = vector.broadcast %16 : f32 to vector<16x256xf32>
    %30 = arith.mulf %29, %28 : vector<16x256xf32>
    %31 = arith.addf %15, %30 : vector<16x256xf32>
    %cst_17 = arith.constant 0.000000e+00 : f32
    %32 = vector.broadcast %cst_17 : f32 to vector<16x256xf32>
    %33 = arith.maximumf %31, %32 : vector<16x256xf32>
    %34 = math.sqrt %33 : vector<16x256xf32>
    %35 = arith.addf %14, %34 : vector<16x256xf32>
    %36 = vector.broadcast %17 : f32 to vector<16x256xf32>
    %37 = arith.mulf %35, %36 : vector<16x256xf32>
    %cst_18 = arith.constant dense<0.000000e+00> : vector<16x256xf32>
    %38 = tpu.matmul %37, %3, %cst_18 {dimension_numbers = #tpu.dot_dimension_numbers<[1], [1], [0], [0], [0, 0, 1, 0], [], []>} : vector<16x256xf32>, vector<256x256xf32>, vector<16x256xf32> -> vector<16x256xf32>
    %cst_19 = arith.constant 9.99999971E-10 : f32
    %39 = vector.broadcast %cst_19 : f32 to vector<16x256xf32>
    %40 = arith.addf %38, %39 : vector<16x256xf32>
    %41 = tpu.reciprocal %40 {approx = true} : vector<16x256xf32> -> vector<16x256xf32>
    %42 = arith.mulf %40, %41 : vector<16x256xf32>
    %cst_20 = arith.constant 2.000000e+00 : f32
    %43 = vector.broadcast %cst_20 : f32 to vector<16x256xf32>
    %44 = arith.subf %43, %42 : vector<16x256xf32>
    %45 = arith.mulf %41, %44 : vector<16x256xf32>
    %46 = arith.mulf %1, %45 : vector<16x256xf32>
    %cst_21 = arith.constant dense<0.000000e+00> : vector<16x256xf32>
    %47 = tpu.matmul %46, %3, %cst_21 {dimension_numbers = #tpu.dot_dimension_numbers<[1], [0], [0], [1], [0, 0, 1, 1], [], []>} : vector<16x256xf32>, vector<256x256xf32>, vector<16x256xf32> -> vector<16x256xf32>
    %48 = arith.mulf %37, %47 : vector<16x256xf32>
    %49 = vector.broadcast %16 : f32 to vector<16x256xf32>
    %50 = arith.mulf %49, %48 : vector<16x256xf32>
    %51 = arith.addf %15, %50 : vector<16x256xf32>
    %cst_22 = arith.constant 0.000000e+00 : f32
    %52 = vector.broadcast %cst_22 : f32 to vector<16x256xf32>
    %53 = arith.maximumf %51, %52 : vector<16x256xf32>
    %54 = math.sqrt %53 : vector<16x256xf32>
    %55 = arith.addf %14, %54 : vector<16x256xf32>
    %56 = vector.broadcast %17 : f32 to vector<16x256xf32>
    %57 = arith.mulf %55, %56 : vector<16x256xf32>
    %cst_23 = arith.constant dense<0.000000e+00> : vector<16x256xf32>
    %58 = tpu.matmul %57, %3, %cst_23 {dimension_numbers = #tpu.dot_dimension_numbers<[1], [1], [0], [0], [0, 0, 1, 0], [], []>} : vector<16x256xf32>, vector<256x256xf32>, vector<16x256xf32> -> vector<16x256xf32>
    %cst_24 = arith.constant 9.99999971E-10 : f32
    %59 = vector.broadcast %cst_24 : f32 to vector<16x256xf32>
    %60 = arith.addf %58, %59 : vector<16x256xf32>
    %61 = tpu.reciprocal %60 {approx = true} : vector<16x256xf32> -> vector<16x256xf32>
    %62 = arith.mulf %60, %61 : vector<16x256xf32>
    %cst_25 = arith.constant 2.000000e+00 : f32
    %63 = vector.broadcast %cst_25 : f32 to vector<16x256xf32>
    %64 = arith.subf %63, %62 : vector<16x256xf32>
    %65 = arith.mulf %61, %64 : vector<16x256xf32>
    %66 = arith.mulf %1, %65 : vector<16x256xf32>
    %cst_26 = arith.constant dense<0.000000e+00> : vector<16x256xf32>
    %67 = tpu.matmul %66, %3, %cst_26 {dimension_numbers = #tpu.dot_dimension_numbers<[1], [0], [0], [1], [0, 0, 1, 1], [], []>} : vector<16x256xf32>, vector<256x256xf32>, vector<16x256xf32> -> vector<16x256xf32>
    %68 = arith.mulf %57, %67 : vector<16x256xf32>
    %69 = vector.broadcast %16 : f32 to vector<16x256xf32>
    %70 = arith.mulf %69, %68 : vector<16x256xf32>
    %71 = arith.addf %15, %70 : vector<16x256xf32>
    %cst_27 = arith.constant 0.000000e+00 : f32
    %72 = vector.broadcast %cst_27 : f32 to vector<16x256xf32>
    %73 = arith.maximumf %71, %72 : vector<16x256xf32>
    %74 = math.sqrt %73 : vector<16x256xf32>
    %75 = arith.addf %14, %74 : vector<16x256xf32>
    %76 = vector.broadcast %17 : f32 to vector<16x256xf32>
    %77 = arith.mulf %75, %76 : vector<16x256xf32>
    %c0_28 = arith.constant 0 : index
    %c0_29 = arith.constant 0 : index
    %78 = vector.load %arg7[%c0_28, %c0_29] : memref<16x256xf32, #tpu.memory_space<vmem>>, vector<16x256xf32>
    tpu.vector_store %arg7[%c0_28, %c0_29], %77 {strides = array<i32>} : memref<16x256xf32, #tpu.memory_space<vmem>>, vector<16x256xf32>,
    return
  }
  func.func @transform_0(%arg0: i32) -> i32 {
    %c0_i32 = arith.constant 0 : i32
    %c0_i32_0 = arith.constant 0 : i32
    return %c0_i32 : i32
  }
  func.func @transform_1(%arg0: i32) -> (i32, i32) {
    %c0_i32 = arith.constant 0 : i32
    %c0_i32_0 = arith.constant 0 : i32
    return %arg0, %c0_i32 : i32, i32
  }
  func.func @transform_2(%arg0: i32) -> (i32, i32) {
    %c0_i32 = arith.constant 0 : i32
    %c0_i32_0 = arith.constant 0 : i32
    return %arg0, %c0_i32 : i32, i32
  }
  func.func @transform_3(%arg0: i32) -> (i32, i32) {
    %c0_i32 = arith.constant 0 : i32
    %c0_i32_0 = arith.constant 0 : i32
    return %arg0, %c0_i32 : i32, i32
  }
  func.func @transform_4(%arg0: i32) -> (i32, i32) {
    %c0_i32 = arith.constant 0 : i32
    %c0_i32_0 = arith.constant 0 : i32
    return %arg0, %c0_i32 : i32, i32
  }
  func.func @transform_5(%arg0: i32) -> (i32, i32) {
    %c0_i32 = arith.constant 0 : i32
    %c0_i32_0 = arith.constant 0 : i32
    %c0_i32_1 = arith.constant 0 : i32
    return %c0_i32, %c0_i32_0 : i32, i32
  }
  func.func @transform_6(%arg0: i32) -> (i32, i32) {
    %c0_i32 = arith.constant 0 : i32
    %c0_i32_0 = arith.constant 0 : i32
    return %arg0, %c0_i32 : i32, i32
  }
}

</mosaic_0001>

<bundles_post_ra>
// kernel: x_update_forward.1
= control target key start
LH: loop header
LB: loop body
LE: loop exit
PB: predicated region body
PF: predicated region fallthrough
CT: control target
= control target key end

     0   :  { %s1938_s5 = inlined_call_operand.vmem [shape: f32[256,256], index: 5, kind: input, shape index: {}]   ;;  %s1939_s2 = inlined_call_operand.vmem [shape: f32[16,256], index: 2, kind: input, shape index: {}]   ;;  %s1940_s0 = inlined_call_operand.<no memory space> [shape: f32[1], index: 0, kind: input, shape index: {}]   ;;  %s1941_s1 = inlined_call_operand.vmem [shape: f32[16,256], index: 1, kind: input, shape index: {}]   ;;  %s1942_s3 = inlined_call_operand.vmem [shape: f32[16,256], index: 3, kind: input, shape index: {}]   ;;  %s1943_s4 = inlined_call_operand.vmem [shape: f32[16,256], index: 4, kind: input, shape index: {}]   ;;  %s1944_s6 = inlined_call_operand.vmem [shape: f32[16,256], index: 6, kind: output, shape index: {}]  }
   0x1   :  { %v958_v0 = vld [vmem:[%s1938_s5 + $0xf8] sm:$0xff]  ;;  %v963_v1 = vld [vmem:[%s1938_s5 + $0xf0] sm:$0xff]  ;;  %v968_v2 = vld [vmem:[%s1938_s5 + $0xe8] sm:$0xff]  ;;  %s130_s14 = smul.f32 4.0, %s1940_s0 }
   0x2   :  { %2016 = vst [vmem:[#allocation3_spill] sm:$0xff] %v958_v0  ;;  %135 = vmatprep.subr.mxu0 %v958_v0  ;;  %232 = vmatprep.subr.mxu1 %v958_v0  ;;  %v978_v3 = vld [vmem:[%s1938_s5 + $0xe0] sm:$0xff]  ;;  %v984_v4 = vld [vmem:[%s1938_s5 + $0xd8] sm:$0xff]  ;;  %v990_v5 = vld [vmem:[%s1938_s5 + $0xd0] sm:$0xff] }
   0x3   :  { %136 = vmatpush1.xpose.msra.mxu0 %v963_v1  ;;  %233 = vmatpush1.msra.mxu1 %v963_v1  ;;  %v997_v6 = vld [vmem:[%s1938_s5 + $0xc8] sm:$0xff]  ;;  %v1004_v7 = vld [vmem:[%s1938_s5 + $0xc0] sm:$0xff]  ;;  %v1010_v8 = vld [vmem:[%s1938_s5 + $0xb8] sm:$0xff] }
   0x4   :  { %137 = vmatprep.subr.mxu0 %v968_v2  ;;  %234 = vmatprep.subr.mxu1 %v968_v2  ;;  %v1016_v9 = vld [vmem:[%s1938_s5 + $0xb0] sm:$0xff]  ;;  %v1023_v10 = vld [vmem:[%s1938_s5 + $0xa8] sm:$0xff]  ;;  %v1030_v11 = vld [vmem:[%s1938_s5 + $0xa0] sm:$0xff] }
   0x5   :  { %235 = vmatpush1.msra.mxu1 %v978_v3  ;;  %v1036_v12 = vld [vmem:[%s1938_s5 + $0x98] sm:$0xff]  ;;  %v1042_v13 = vld [vmem:[%s1938_s5 + $0x90] sm:$0xff]  ;;  %v1049_v14 = vld [vmem:[%s1938_s5 + $0x88] sm:$0xff] }
   0x6   :  { %236 = vmatprep.subr.mxu1 %v984_v4  ;;  %v1056_v15 = vld [vmem:[%s1938_s5 + $0x80] sm:$0xff]  ;;  %v1062_v16 = vld [vmem:[%s1938_s5 + $0x78] sm:$0xff]  ;;  %v1068_v17 = vld [vmem:[%s1938_s5 + $0x70] sm:$0xff] }
   0x7   :  { %138 = vmatpush1.xpose.msra.mxu0 %v978_v3  ;;  %237 = vmatpush1.msra.mxu1 %v990_v5  ;;  %v1075_v18 = vld [vmem:[%s1938_s5 + $0x68] sm:$0xff]  ;;  %v1082_v19 = vld [vmem:[%s1938_s5 + $0x60] sm:$0xff]  ;;  %v1088_v20 = vld [vmem:[%s1938_s5 + $0x58] sm:$0xff] }
   0x8   :  { %139 = vmatprep.subr.mxu0 %v984_v4  ;;  %238 = vmatprep.subr.mxu1 %v997_v6  ;;  %v1094_v21 = vld [vmem:[%s1939_s2 + $0x8] sm:$0xff]  ;;  %v1101_v22 = vld [vmem:[%s1938_s5 + $0x50] sm:$0xff]  ;;  %v1114_v24 = vld [vmem:[%s1938_s5 + $0x40] sm:$0xff] }
   0x9   :  { %239 = vmatpush1.msra.mxu1 %v1004_v7  ;;  %2017 = vst [vmem:[#allocation4_spill] sm:$0xff] %v1094_v21  ;;  %199 = vmatprep.mubr.f32.mxu0 %v1094_v21  ;;  %v1108_v23 = vld [vmem:[%s1938_s5 + $0x48] sm:$0xff]  ;;  %v1120_v25 = vld [vmem:[%s1938_s5 + $0x38] sm:$0xff]  ;;  %v1127_v26 = vld [vmem:[%s1938_s5 + $0x30] sm:$0xff] }
   0xa   :  { %240 = vmatprep.subr.mxu1 %v1010_v8  ;;  %v1134_v27 = vld [vmem:[%s1938_s5 + $0x28] sm:$0xff]  ;;  %v1140_v28 = vld [vmem:[%s1938_s5 + $0x20] sm:$0xff]  ;;  %v1146_v29 = vld [vmem:[%s1938_s5 + $0x18] sm:$0xff] }
   0xb   :  { %140 = vmatpush1.xpose.msra.mxu0 %v990_v5  ;;  %241 = vmatpush1.msra.mxu1 %v1016_v9  ;;  %v1153_v30 = vld [vmem:[%s1938_s5 + $0x10] sm:$0xff]  ;;  %v1160_v31 = vld [vmem:[%s1938_s5 + $0x8] sm:$0xff]  ;;  %v1166_v32 = vld [vmem:[%s1938_s5] sm:$0xff] }
   0xc   :  { %141 = vmatprep.subr.mxu0 %v997_v6  ;;  %242 = vmatprep.subr.mxu1 %v1023_v10  ;;  %v1172_v33 = vld [vmem:[%s1938_s5 + $0x1f8] sm:$0xff]  ;;  %v1179_v34 = vld [vmem:[%s1938_s5 + $0x1f0] sm:$0xff]  ;;  %v1186_v35 = vld [vmem:[%s1938_s5 + $0x1e8] sm:$0xff] }
   0xd   :  { %243 = vmatpush1.msra.mxu1 %v1030_v11  ;;  %v1192_v36 = vld [vmem:[%s1938_s5 + $0x1e0] sm:$0xff]  ;;  %v1198_v37 = vld [vmem:[%s1938_s5 + $0x1d8] sm:$0xff]  ;;  %v1205_v38 = vld [vmem:[%s1938_s5 + $0x1d0] sm:$0xff] }
   0xe   :  { %244 = vmatprep.subr.mxu1 %v1036_v12  ;;  %v1212_v39 = vld [vmem:[%s1938_s5 + $0x1c8] sm:$0xff]  ;;  %v1218_v40 = vld [vmem:[%s1938_s5 + $0x1c0] sm:$0xff]  ;;  %v1224_v41 = vld [vmem:[%s1938_s5 + $0x1b8] sm:$0xff] }
   0xf   :  { %142 = vmatpush1.xpose.msra.mxu0 %v1004_v7  ;;  %245 = vmatpush1.msra.mxu1 %v1042_v13  ;;  %2018 = vst [vmem:[#allocation5_spill] sm:$0xff] %v1224_v41  ;;  %v1231_v42 = vld [vmem:[%s1938_s5 + $0x1b0] sm:$0xff]  ;;  %v1238_v43 = vld [vmem:[%s1938_s5 + $0x1a8] sm:$0xff]  ;;  %v1244_v44 = vld [vmem:[%s1938_s5 + $0x1a0] sm:$0xff] }
  0x10   :  { %143 = vmatprep.subr.mxu0 %v1010_v8  ;;  %246 = vmatprep.subr.mxu1 %v1049_v14  ;;  %2019 = vst [vmem:[#allocation6_spill] sm:$0xff] %v1231_v42  ;;  %2020 = vst [vmem:[#allocation7_spill] sm:$0xff] %v1238_v43  ;;  %v1250_v45 = vld [vmem:[%s1938_s5 + $0x198] sm:$0xff]  ;;  %v1257_v46 = vld [vmem:[%s1938_s5 + $0x190] sm:$0xff] }
  0x11   :  { %247 = vmatpush1.msra.mxu1 %v1056_v15  ;;  %2021 = vst [vmem:[#allocation8_spill] sm:$0xff] %v1244_v44  ;;  %2022 = vst [vmem:[#allocation9_spill] sm:$0xff] %v1250_v45  ;;  %v1264_v47 = vld [vmem:[%s1938_s5 + $0x188] sm:$0xff]  ;;  %v1270_v48 = vld [vmem:[%s1938_s5 + $0x180] sm:$0xff] }
  0x12   :  { %248 = vmatprep.subr.mxu1 %v1062_v16  ;;  %2023 = vst [vmem:[#allocation10_spill] sm:$0xff] %v1257_v46  ;;  %2024 = vst [vmem:[#allocation11_spill] sm:$0xff] %v1264_v47  ;;  %v1276_v49 = vld [vmem:[%s1938_s5 + $0x178] sm:$0xff]  ;;  %v1283_v50 = vld [vmem:[%s1938_s5 + $0x170] sm:$0xff] }
  0x13   :  { %144 = vmatpush1.xpose.msra.mxu0 %v1016_v9  ;;  %249 = vmatpush1.msra.mxu1 %v1068_v17  ;;  %2025 = vst [vmem:[#allocation12_spill] sm:$0xff] %v1270_v48  ;;  %2026 = vst [vmem:[#allocation13_spill] sm:$0xff] %v1276_v49  ;;  %v1290_v51 = vld [vmem:[%s1938_s5 + $0x168] sm:$0xff]  ;;  %v1296_v52 = vld [vmem:[%s1938_s5 + $0x160] sm:$0xff] }
  0x14   :  { %145 = vmatprep.subr.mxu0 %v1023_v10  ;;  %250 = vmatprep.subr.mxu1 %v1075_v18  ;;  %2027 = vst [vmem:[#allocation14_spill] sm:$0xff] %v1283_v50  ;;  %2028 = vst [vmem:[#allocation15_spill] sm:$0xff] %v1290_v51  ;;  %v1302_v53 = vld [vmem:[%s1938_s5 + $0x158] sm:$0xff]  ;;  %v1309_v54 = vld [vmem:[%s1938_s5 + $0x150] sm:$0xff] }
  0x15   :  { %251 = vmatpush1.msra.mxu1 %v1082_v19  ;;  %2029 = vst [vmem:[#allocation16_spill] sm:$0xff] %v1296_v52  ;;  %2030 = vst [vmem:[#allocation17_spill] sm:$0xff] %v1302_v53  ;;  %v1316_v55 = vld [vmem:[%s1938_s5 + $0x148] sm:$0xff]  ;;  %v1322_v56 = vld [vmem:[%s1938_s5 + $0x140] sm:$0xff] }
  0x16   :  { %252 = vmatprep.subr.mxu1 %v1088_v20  ;;  %2031 = vst [vmem:[#allocation18_spill] sm:$0xff] %v1309_v54  ;;  %2032 = vst [vmem:[#allocation19_spill] sm:$0xff] %v1316_v55  ;;  %v1328_v57 = vld [vmem:[%s1938_s5 + $0x138] sm:$0xff]  ;;  %v1335_v58 = vld [vmem:[%s1938_s5 + $0x130] sm:$0xff] }
  0x17   :  { %146 = vmatpush1.xpose.msra.mxu0 %v1030_v11  ;;  %253 = vmatpush1.msra.mxu1 %v1101_v22  ;;  %2033 = vst [vmem:[#allocation20_spill] sm:$0xff] %v1322_v56  ;;  %2034 = vst [vmem:[#allocation21_spill] sm:$0xff] %v1328_v57  ;;  %v1342_v59 = vld [vmem:[%s1938_s5 + $0x128] sm:$0xff]  ;;  %v1348_v60 = vld [vmem:[%s1938_s5 + $0x120] sm:$0xff] }
  0x18   :  { %147 = vmatprep.subr.mxu0 %v1036_v12  ;;  %254 = vmatprep.subr.mxu1 %v1108_v23  ;;  %2035 = vst [vmem:[#allocation22_spill] sm:$0xff] %v1335_v58  ;;  %2036 = vst [vmem:[#allocation23_spill] sm:$0xff] %v1342_v59  ;;  %v1354_v61 = vld [vmem:[%s1938_s5 + $0x118] sm:$0xff]  ;;  %v1361_v62 = vld [vmem:[%s1938_s5 + $0x110] sm:$0xff] }
  0x19   :  { %255 = vmatpush1.msra.mxu1 %v1114_v24  ;;  %2037 = vst [vmem:[#allocation24_spill] sm:$0xff] %v1348_v60  ;;  %2038 = vst [vmem:[#allocation25_spill] sm:$0xff] %v1354_v61  ;;  %v1368_v63 = vld [vmem:[%s1938_s5 + $0x108] sm:$0xff]  ;;  %v1374_v21 = vld [vmem:[%s1938_s5 + $0x100] sm:$0xff] }
  0x1a   :  { %256 = vmatprep.subr.mxu1 %v1120_v25  ;;  %2039 = vst [vmem:[#allocation26_spill] sm:$0xff] %v1361_v62  ;;  %2040 = vst [vmem:[#allocation27_spill] sm:$0xff] %v1368_v63 }
  0x1b   :  { %148 = vmatpush1.xpose.msra.mxu0 %v1042_v13  ;;  %257 = vmatpush1.msra.mxu1 %v1127_v26  ;;  %2041 = vst [vmem:[#allocation28_spill] sm:$0xff] %v1374_v21 }
  0x1c   :  { %149 = vmatprep.subr.mxu0 %v1049_v14  ;;  %258 = vmatprep.subr.mxu1 %v1134_v27 }
  0x1d   :  { %259 = vmatpush1.msra.mxu1 %v1140_v28 }
  0x1e   :  { %260 = vmatprep.subr.mxu1 %v1146_v29 }
  0x1f   :  { %150 = vmatpush1.xpose.msra.mxu0 %v1056_v15  ;;  %261 = vmatpush1.msra.mxu1 %v1153_v30 }
  0x20   :  { %151 = vmatprep.subr.mxu0 %v1062_v16  ;;  %262 = vmatprep.subr.mxu1 %v1160_v31 }
  0x21   :  { %263 = vmatpush1.msra.mxu1 %v1166_v32 }
  0x22   :  { %264 = vmatprep.subr.mxu1 %v1172_v33 }
  0x23   :  { %152 = vmatpush1.xpose.msra.mxu0 %v1068_v17  ;;  %265 = vmatpush2.msra.mxu1 %v1179_v34 }
  0x24   :  { %153 = vmatprep.subr.mxu0 %v1075_v18  ;;  %266 = vmatprep.subr.mxu1 %v1186_v35 }
  0x25   :  { %267 = vmatpush2.msra.mxu1 %v1192_v36 }
  0x26   :  { %268 = vmatprep.subr.mxu1 %v1198_v37 }
  0x27   :  { %154 = vmatpush1.xpose.msra.mxu0 %v1082_v19  ;;  %269 = vmatpush2.msra.mxu1 %v1205_v38 }
  0x28   :  { %155 = vmatprep.subr.mxu0 %v1088_v20  ;;  %270 = vmatprep.subr.mxu1 %v1212_v39 }
  0x29   :  { %271 = vmatpush2.msra.mxu1 %v1218_v40 }
  0x2a   :  { %272 = vmatprep.subr.mxu1 %v1224_v41 }
  0x2b   :  { %156 = vmatpush1.xpose.msra.mxu0 %v1101_v22  ;;  %273 = vmatpush2.msra.mxu1 %v1231_v42 }
  0x2c   :  { %157 = vmatprep.subr.mxu0 %v1108_v23  ;;  %274 = vmatprep.subr.mxu1 %v1238_v43 }
  0x2d   :  { %275 = vmatpush2.msra.mxu1 %v1244_v44 }
  0x2e   :  { %276 = vmatprep.subr.mxu1 %v1250_v45 }
  0x2f   :  { %158 = vmatpush1.xpose.msra.mxu0 %v1114_v24  ;;  %277 = vmatpush2.msra.mxu1 %v1257_v46 }
  0x30   :  { %159 = vmatprep.subr.mxu0 %v1120_v25  ;;  %278 = vmatprep.subr.mxu1 %v1264_v47 }
  0x31   :  { %279 = vmatpush2.msra.mxu1 %v1270_v48 }
  0x32   :  { %280 = vmatprep.subr.mxu1 %v1276_v49 }
  0x33   :  { %160 = vmatpush1.xpose.msra.mxu0 %v1127_v26  ;;  %281 = vmatpush2.msra.mxu1 %v1283_v50 }
  0x34   :  { %161 = vmatprep.subr.mxu0 %v1134_v27  ;;  %282 = vmatprep.subr.mxu1 %v1290_v51 }
  0x35   :  { %283 = vmatpush2.msra.mxu1 %v1296_v52 }
  0x36   :  { %284 = vmatprep.subr.mxu1 %v1302_v53 }
  0x37   :  { %162 = vmatpush1.xpose.msra.mxu0 %v1140_v28  ;;  %285 = vmatpush2.msra.mxu1 %v1309_v54 }
  0x38   :  { %163 = vmatprep.subr.mxu0 %v1146_v29  ;;  %286 = vmatprep.subr.mxu1 %v1316_v55 }
  0x39   :  { %287 = vmatpush2.msra.mxu1 %v1322_v56 }
  0x3a   :  { %288 = vmatprep.subr.mxu1 %v1328_v57 }
  0x3b   :  { %164 = vmatpush1.xpose.msra.mxu0 %v1153_v30  ;;  %289 = vmatpush2.msra.mxu1 %v1335_v58 }
  0x3c   :  { %165 = vmatprep.subr.mxu0 %v1160_v31  ;;  %290 = vmatprep.subr.mxu1 %v1342_v59 }
  0x3d   :  { %291 = vmatpush2.msra.mxu1 %v1348_v60 }
  0x3e   :  { %292 = vmatprep.subr.mxu1 %v1354_v61 }
  0x3f   :  { %166 = vmatpush1.xpose.msra.mxu0 %v1166_v32  ;;  %293 = vmatpush2.msra.mxu1 %v1361_v62 }
  0x40   :  { %167 = vmatprep.subr.mxu0 %v1172_v33  ;;  %294 = vmatprep.subr.mxu1 %v1368_v63 }
  0x41   :  { %295 = vmatpush2.msra.mxu1 %v1374_v21 }
  0x42   :  { %363 = vmatprep.subr.mxu1 %v958_v0 }
  0x43   :  { %168 = vmatpush2.xpose.msra.mxu0 %v1179_v34 }
  0x44   :  { %169 = vmatprep.subr.mxu0 %v1186_v35 }
  0x47   :  { %170 = vmatpush2.xpose.msra.mxu0 %v1192_v36 }
  0x48   :  { %171 = vmatprep.subr.mxu0 %v1198_v37 }
  0x4b   :  { %172 = vmatpush2.xpose.msra.mxu0 %v1205_v38 }
  0x4c   :  { %173 = vmatprep.subr.mxu0 %v1212_v39 }
  0x4f   :  { %174 = vmatpush2.xpose.msra.mxu0 %v1218_v40 }
  0x50   :  { %175 = vmatprep.subr.mxu0 %v1224_v41 }
  0x53   :  { %176 = vmatpush2.xpose.msra.mxu0 %v1231_v42 }
  0x54   :  { %177 = vmatprep.subr.mxu0 %v1238_v43 }
  0x57   :  { %178 = vmatpush2.xpose.msra.mxu0 %v1244_v44 }
  0x58   :  { %179 = vmatprep.subr.mxu0 %v1250_v45 }
  0x5b   :  { %180 = vmatpush2.xpose.msra.mxu0 %v1257_v46 }
  0x5c   :  { %181 = vmatprep.subr.mxu0 %v1264_v47 }
  0x5f   :  { %182 = vmatpush2.xpose.msra.mxu0 %v1270_v48 }
  0x60   :  { %183 = vmatprep.subr.mxu0 %v1276_v49 }
  0x63   :  { %184 = vmatpush2.xpose.msra.mxu0 %v1283_v50 }
  0x64   :  { %185 = vmatprep.subr.mxu0 %v1290_v51 }
  0x67   :  { %186 = vmatpush2.xpose.msra.mxu0 %v1296_v52 }
  0x68   :  { %187 = vmatprep.subr.mxu0 %v1302_v53 }
  0x6b   :  { %188 = vmatpush2.xpose.msra.mxu0 %v1309_v54 }
  0x6c   :  { %189 = vmatprep.subr.mxu0 %v1316_v55 }
  0x6f   :  { %190 = vmatpush2.xpose.msra.mxu0 %v1322_v56  ;;  %v1413_v56 = vld [vmem:[%s1939_s2] sm:$0xff] }
  0x70   :  { %191 = vmatprep.subr.mxu0 %v1328_v57  ;;  %2042 = vst [vmem:[#allocation29_spill] sm:$0xff] %v1413_v56 }
  0x73   :  { %192 = vmatpush2.xpose.msra.mxu0 %v1335_v58  ;;  %v1418_v58 = vld [vmem:[%s1939_s2 + $0x18] sm:$0xff] }
  0x74   :  { %193 = vmatprep.subr.mxu0 %v1342_v59  ;;  %2043 = vst [vmem:[#allocation30_spill] sm:$0xff] %v1418_v58 }
  0x77   :  { %194 = vmatpush2.xpose.msra.mxu0 %v1348_v60 }
  0x78   :  { %195 = vmatprep.subr.mxu0 %v1354_v61 }
  0x7b   :  { %196 = vmatpush2.xpose.msra.mxu0 %v1361_v62 }
  0x7c   :  { %197 = vmatprep.subr.mxu0 %v1368_v63 }
  0x7f   :  { %198 = vmatpush2.xpose.msra.mxu0 %v1374_v21  ;;  %v1426_v21 = vld [vmem:[%s1939_s2 + $0x10] sm:$0xff] }
  0x80   :  { %460 = vmatprep.subr.mxu0 %v958_v0  ;;  %2044 = vst [vmem:[#allocation31_spill] sm:$0xff] %v1426_v21 }
  0x82   :  { %200 = vmatmul.mubr.f32.vlgmr.msra.gmra.mxu0 %v1413_v56  ;;  %v2047_v56 = vld [vmem:[#allocation28_spill] sm:$0xff] }
  0x83   :  { %205 = vmatprep.mubr.f32.mxu0 %v1418_v58  ;;  %461 = vmatpush1.msra.mxu0 %v963_v1  ;;  %v2045_v58 = vld [vmem:[#allocation20_spill] sm:$0xff] }
  0x84   :  { %462 = vmatprep.subr.mxu0 %v968_v2 }
  0x85   :  { %463 = vmatpush1.msra.mxu0 %v978_v3 }
  0x86   :  { %206 = vmatmul.mubr.f32.gmra.mxu0 %v1426_v21  ;;  %464 = vmatprep.subr.mxu0 %v984_v4  ;;  %v2046_v21 = vld [vmem:[#allocation22_spill] sm:$0xff] }
  0x87   :  { %465 = vmatpush1.msra.mxu0 %v990_v5 }
  0x88   :  { %466 = vmatprep.subr.mxu0 %v997_v6 }
  0x89   :  { %467 = vmatpush1.msra.mxu0 %v1004_v7 }
  0x8a   :  { %468 = vmatprep.subr.mxu0 %v1010_v8 }
  0x8b   :  { %469 = vmatpush1.msra.mxu0 %v1016_v9 }
  0x8c   :  { %470 = vmatprep.subr.mxu0 %v1023_v10 }
  0x8d   :  { %471 = vmatpush1.msra.mxu0 %v1030_v11 }
  0x8e   :  { %472 = vmatprep.subr.mxu0 %v1036_v12 }
  0x8f   :  { %473 = vmatpush1.msra.mxu0 %v1042_v13 }
  0x90   :  { %474 = vmatprep.subr.mxu0 %v1049_v14 }
  0x91   :  { %475 = vmatpush1.msra.mxu0 %v1056_v15 }
  0x92   :  { %476 = vmatprep.subr.mxu0 %v1062_v16 }
  0x93   :  { %477 = vmatpush1.msra.mxu0 %v1068_v17 }
  0x94   :  { %478 = vmatprep.subr.mxu0 %v1075_v18 }
  0x95   :  { %479 = vmatpush1.msra.mxu0 %v1082_v19 }
  0x96   :  { %480 = vmatprep.subr.mxu0 %v1088_v20 }
  0x97   :  { %481 = vmatpush1.msra.mxu0 %v1101_v22 }
  0x98   :  { %482 = vmatprep.subr.mxu0 %v1108_v23 }
  0x99   :  { %483 = vmatpush1.msra.mxu0 %v1114_v24 }
  0x9a   :  { %484 = vmatprep.subr.mxu0 %v1120_v25 }
  0x9b   :  { %485 = vmatpush1.msra.mxu0 %v1127_v26 }
  0x9c   :  { %486 = vmatprep.subr.mxu0 %v1134_v27 }
  0x9d   :  { %487 = vmatpush1.msra.mxu0 %v1140_v28 }
  0x9e   :  { %488 = vmatprep.subr.mxu0 %v1146_v29 }
  0x9f   :  { %489 = vmatpush1.msra.mxu0 %v1153_v30 }
  0xa0   :  { %490 = vmatprep.subr.mxu0 %v1160_v31 }
  0xa1   :  { %491 = vmatpush1.msra.mxu0 %v1166_v32 }
  0xa2   :  { %492 = vmatprep.subr.mxu0 %v1172_v33 }
  0xa3   :  { %493 = vmatpush2.msra.mxu0 %v1179_v34 }
  0xa4   :  { %494 = vmatprep.subr.mxu0 %v1186_v35 }
  0xa5   :  { %495 = vmatpush2.msra.mxu0 %v1192_v36 }
  0xa6   :  { %496 = vmatprep.subr.mxu0 %v1198_v37 }
  0xa7   :  { %497 = vmatpush2.msra.mxu0 %v1205_v38 }
  0xa8   :  { %498 = vmatprep.subr.mxu0 %v1212_v39 }
  0xa9   :  { %499 = vmatpush2.msra.mxu0 %v1218_v40 }
  0xaa   :  { %500 = vmatprep.subr.mxu0 %v1224_v41 }
  0xab   :  { %501 = vmatpush2.msra.mxu0 %v1231_v42 }
  0xac   :  { %502 = vmatprep.subr.mxu0 %v1238_v43 }
  0xad   :  { %503 = vmatpush2.msra.mxu0 %v1244_v44 }
  0xae   :  { %504 = vmatprep.subr.mxu0 %v1250_v45 }
  0xaf   :  { %505 = vmatpush2.msra.mxu0 %v1257_v46 }
  0xb0   :  { %506 = vmatprep.subr.mxu0 %v1264_v47 }
  0xb1   :  { %507 = vmatpush2.msra.mxu0 %v1270_v48 }
  0xb2   :  { %508 = vmatprep.subr.mxu0 %v1276_v49 }
  0xb3   :  { %509 = vmatpush2.msra.mxu0 %v1283_v50 }
  0xb4   :  { %510 = vmatprep.subr.mxu0 %v1290_v51 }
  0xb5   :  { %511 = vmatpush2.msra.mxu0 %v1296_v52 }
  0xb6   :  { %512 = vmatprep.subr.mxu0 %v1302_v53 }
  0xb7   :  { %513 = vmatpush2.msra.mxu0 %v1309_v54 }
  0xb8   :  { %514 = vmatprep.subr.mxu0 %v1316_v55 }
  0xb9   :  { %515 = vmatpush2.msra.mxu0 %v2045_v58 }
  0xba   :  { %516 = vmatprep.subr.mxu0 %v1328_v57  ;;  %v1496_v57 = vstv %s1940_s0 }
  0xbb   :  { %517 = vmatpush2.msra.mxu0 %v2046_v21  ;;  %2048 = vst [vmem:[#allocation32_spill] sm:$0xff] %v1496_v57  ;;  %829 = vrcp.f32 %v1496_v57 }
  0xbc   :  { %518 = vmatprep.subr.mxu0 %v1342_v59 }
  0xbd   :  { %519 = vmatpush2.msra.mxu0 %v1348_v60 }
  0xbe   :  { %520 = vmatprep.subr.mxu0 %v1354_v61 }
  0xbf   :  { %521 = vmatpush2.msra.mxu0 %v1361_v62 }
  0xc0   :  { %522 = vmatprep.subr.mxu0 %v1368_v63 }
  0xc1   :  { %523 = vmatpush2.msra.mxu0 %v2047_v56 }
  0xc2   :  { %589 = vmatprep.subr.mxu0 %v958_v0 }
  0xc8   :  { %v830_v59 = vpop.eup %829 }
  0xc9   :  { %827 = vpush %v830_v59 }
  0xfa   :  { %s828_s0 = spop %827 }
 0x142   :  { %v201_v60 = vpop.f32.mrf.mxu0 }
 0x143   :  { %v202_v21 = vadd.f32 1e-09, %v201_v60 }
 0x144   :  { %v203_v61 = vpop.f32.mrf.mxu0 }
 0x145   :  { %831 = vrcp.f32 %v202_v21  ;;  %v204_v62 = vadd.f32 1e-09, %v203_v61  ;;  %v1502_v61 = vld [vmem:[%s1941_s1 + $0x8] sm:$0xff] }
 0x146   :  { %v207_v58 = vpop.f32.mrf.mxu0  ;;  %2049 = vst [vmem:[#allocation33_spill] sm:$0xff] %v1502_v61 }
 0x147   :  { %833 = vrcp.f32 %v204_v62  ;;  %v208_v63 = vadd.f32 1e-09, %v207_v58 }
 0x148   :  { %v209_v56 = vpop.f32.mrf.mxu0 }
 0x149   :  { %835 = vrcp.f32 %v208_v63  ;;  %v210_v0 = vadd.f32 1e-09, %v209_v56 }
 0x14b   :  { %837 = vrcp.f32 %v210_v0 }
 0x152   :  { %v832_v55 = vpop.eup %831 }
 0x153   :  { %v216_v54 = vmul.f32 %v832_v55, %v202_v21  ;;  %v1507_v21 = vld [vmem:[%s1941_s1] sm:$0xff] }
 0x154   :  { %v834_v53 = vpop.eup %833  ;;  %2050 = vst [vmem:[#allocation34_spill] sm:$0xff] %v1507_v21 }
 0x155   :  { %v220_v52 = vsub.f32 2.0, %v216_v54  ;;  %v217_v51 = vmul.f32 %v834_v53, %v204_v62 }
 0x156   :  { %v836_v57 = vpop.eup %835 }
 0x157   :  { %v221_v50 = vsub.f32 2.0, %v217_v51  ;;  %v218_v59 = vmul.f32 %v836_v57, %v208_v63  ;;  %v224_v60 = vmul.f32 %v832_v55, %v220_v52  ;;  %v1514_v52 = vld [vmem:[%s1941_s1 + $0x18] sm:$0xff]  ;;  %v2057_v63 = vld [vmem:[#allocation15_spill] sm:$0xff] }
 0x158   :  { %v838_v49 = vpop.eup %837  ;;  %2051 = vst [vmem:[#allocation35_spill] sm:$0xff] %v1514_v52 }
 0x159   :  { %v222_v58 = vsub.f32 2.0, %v218_v59  ;;  %v219_v48 = vmul.f32 %v838_v49, %v210_v0  ;;  %v225_v47 = vmul.f32 %v834_v53, %v221_v50  ;;  %v228_v62 = vmul.f32 %v224_v60, %v1507_v21  ;;  %v1519_v0 = vld [vmem:[%s1941_s1 + $0x10] sm:$0xff]  ;;  %v2054_v50 = vld [vmem:[#allocation12_spill] sm:$0xff] }
 0x15a   :  { %2052 = vst [vmem:[#allocation36_spill] sm:$0xff] %v1519_v0  ;;  %v2055_v53 = vld [vmem:[#allocation13_spill] sm:$0xff]  ;;  %v2058_v59 = vld [vmem:[#allocation16_spill] sm:$0xff] }
 0x15b   :  { %v223_v54 = vsub.f32 2.0, %v219_v48  ;;  %v229_v56 = vmul.f32 %v225_v47, %v1502_v61  ;;  %v226_v51 = vmul.f32 %v836_v57, %v222_v58  ;;  %v2056_v57 = vld [vmem:[#allocation14_spill] sm:$0xff]  ;;  %v2059_v60 = vld [vmem:[#allocation17_spill] sm:$0xff]  ;;  %v2070_v21 = vld [vmem:[#allocation28_spill] sm:$0xff] }
 0x15c   :  { %v2060_v58 = vld [vmem:[#allocation18_spill] sm:$0xff]  ;;  %v2071_v61 = vld [vmem:[#allocation3_spill] sm:$0xff] }
 0x15d   :  { %v227_v55 = vmul.f32 %v838_v49, %v223_v54  ;;  %296 = vmatprep.mubr.f32.mxu1 %v229_v56  ;;  %v230_v47 = vmul.f32 %v226_v51, %v1519_v0  ;;  %v2053_v49 = vld [vmem:[#allocation11_spill] sm:$0xff]  ;;  %v2062_v56 = vld [vmem:[#allocation20_spill] sm:$0xff]  ;;  %v2063_v51 = vld [vmem:[#allocation21_spill] sm:$0xff] }
 0x15e   :  { %297 = vmatmul.mubr.f32.vlgmr.msra.gmra.mxu1 %v228_v62  ;;  %v2061_v54 = vld [vmem:[#allocation19_spill] sm:$0xff]  ;;  %v2064_v62 = vld [vmem:[#allocation22_spill] sm:$0xff] }
 0x15f   :  { %v231_v48 = vmul.f32 %v227_v55, %v1514_v52  ;;  %364 = vmatpush1.xpose.msra.mxu1 %v963_v1  ;;  %v2065_v55 = vld [vmem:[#allocation23_spill] sm:$0xff]  ;;  %v2068_v0 = vld [vmem:[#allocation26_spill] sm:$0xff] }
 0x160   :  { %365 = vmatprep.subr.mxu1 %v968_v2  ;;  %v2069_v52 = vld [vmem:[#allocation27_spill] sm:$0xff] }
 0x161   :  { %302 = vmatprep.mubr.f32.mxu1 %v231_v48  ;;  %v2066_v48 = vld [vmem:[#allocation24_spill] sm:$0xff] }
 0x162   :  { %303 = vmatmul.mubr.f32.gmra.mxu1 %v230_v47  ;;  %v2067_v47 = vld [vmem:[#allocation25_spill] sm:$0xff] }
 0x163   :  { %366 = vmatpush1.xpose.msra.mxu1 %v978_v3 }
 0x164   :  { %367 = vmatprep.subr.mxu1 %v984_v4 }
 0x167   :  { %368 = vmatpush1.xpose.msra.mxu1 %v990_v5 }
 0x168   :  { %369 = vmatprep.subr.mxu1 %v997_v6 }
 0x16b   :  { %370 = vmatpush1.xpose.msra.mxu1 %v1004_v7 }
 0x16c   :  { %371 = vmatprep.subr.mxu1 %v1010_v8 }
 0x16f   :  { %372 = vmatpush1.xpose.msra.mxu1 %v1016_v9 }
 0x170   :  { %373 = vmatprep.subr.mxu1 %v1023_v10 }
 0x173   :  { %374 = vmatpush1.xpose.msra.mxu1 %v1030_v11 }
 0x174   :  { %375 = vmatprep.subr.mxu1 %v1036_v12 }
 0x177   :  { %376 = vmatpush1.xpose.msra.mxu1 %v1042_v13 }
 0x178   :  { %377 = vmatprep.subr.mxu1 %v1049_v14 }
 0x17b   :  { %378 = vmatpush1.xpose.msra.mxu1 %v1056_v15 }
 0x17c   :  { %379 = vmatprep.subr.mxu1 %v1062_v16 }
 0x17f   :  { %380 = vmatpush1.xpose.msra.mxu1 %v1068_v17 }
 0x180   :  { %381 = vmatprep.subr.mxu1 %v1075_v18 }
 0x183   :  { %382 = vmatpush1.xpose.msra.mxu1 %v1082_v19 }
 0x184   :  { %383 = vmatprep.subr.mxu1 %v1088_v20 }
 0x187   :  { %384 = vmatpush1.xpose.msra.mxu1 %v1101_v22 }
 0x188   :  { %385 = vmatprep.subr.mxu1 %v1108_v23 }
 0x18b   :  { %386 = vmatpush1.xpose.msra.mxu1 %v1114_v24 }
 0x18c   :  { %387 = vmatprep.subr.mxu1 %v1120_v25 }
 0x18f   :  { %388 = vmatpush1.xpose.msra.mxu1 %v1127_v26 }
 0x190   :  { %389 = vmatprep.subr.mxu1 %v1134_v27 }
 0x193   :  { %390 = vmatpush1.xpose.msra.mxu1 %v1140_v28 }
 0x194   :  { %391 = vmatprep.subr.mxu1 %v1146_v29 }
 0x197   :  { %392 = vmatpush1.xpose.msra.mxu1 %v1153_v30 }
 0x198   :  { %393 = vmatprep.subr.mxu1 %v1160_v31 }
 0x19b   :  { %394 = vmatpush1.xpose.msra.mxu1 %v1166_v32 }
 0x19c   :  { %395 = vmatprep.subr.mxu1 %v1172_v33 }
 0x19f   :  { %396 = vmatpush2.xpose.msra.mxu1 %v1179_v34 }
 0x1a0   :  { %397 = vmatprep.subr.mxu1 %v1186_v35 }
 0x1a3   :  { %398 = vmatpush2.xpose.msra.mxu1 %v1192_v36 }
 0x1a4   :  { %399 = vmatprep.subr.mxu1 %v1198_v37 }
 0x1a7   :  { %400 = vmatpush2.xpose.msra.mxu1 %v1205_v38 }
 0x1a8   :  { %401 = vmatprep.subr.mxu1 %v1212_v39 }
 0x1ab   :  { %402 = vmatpush2.xpose.msra.mxu1 %v1218_v40 }
 0x1ac   :  { %403 = vmatprep.subr.mxu1 %v1224_v41 }
 0x1af   :  { %404 = vmatpush2.xpose.msra.mxu1 %v1231_v42 }
 0x1b0   :  { %405 = vmatprep.subr.mxu1 %v1238_v43 }
 0x1b3   :  { %406 = vmatpush2.xpose.msra.mxu1 %v1244_v44 }
 0x1b4   :  { %407 = vmatprep.subr.mxu1 %v1250_v45 }
 0x1b7   :  { %408 = vmatpush2.xpose.msra.mxu1 %v1257_v46  ;;  %v1622_v46 = vstv %s130_s14 }
 0x1b8   :  { %409 = vmatprep.subr.mxu1 %v2053_v49  ;;  %2073 = vst [vmem:[#allocation3_spill] sm:$0xff] %v1622_v46 }
 0x1bb   :  { %410 = vmatpush2.xpose.msra.mxu1 %v2054_v50 }
 0x1bc   :  { %411 = vmatprep.subr.mxu1 %v2055_v53 }
 0x1bf   :  { %412 = vmatpush2.xpose.msra.mxu1 %v2056_v57 }
 0x1c0   :  { %413 = vmatprep.subr.mxu1 %v2057_v63 }
 0x1c3   :  { %414 = vmatpush2.xpose.msra.mxu1 %v2058_v59 }
 0x1c4   :  { %415 = vmatprep.subr.mxu1 %v2059_v60 }
 0x1c7   :  { %416 = vmatpush2.xpose.msra.mxu1 %v2060_v58  ;;  %v100_v58 = vld [vmem:[%s1943_s4 + $0x18] sm:$0xff] }
 0x1c8   :  { %417 = vmatprep.subr.mxu1 %v2061_v54 }
 0x1cb   :  { %418 = vmatpush2.xpose.msra.mxu1 %v2062_v56 }
 0x1cc   :  { %419 = vmatprep.subr.mxu1 %v2063_v51  ;;  %v97_v51 = vld [vmem:[%s1943_s4] sm:$0xff] }
 0x1cf   :  { %420 = vmatpush2.xpose.msra.mxu1 %v2064_v62  ;;  %v108_v62 = vld [vmem:[%s1942_s3 + $0x10] sm:$0xff] }
 0x1d0   :  { %421 = vmatprep.subr.mxu1 %v2065_v55  ;;  %v106_v55 = vld [vmem:[%s1942_s3] sm:$0xff] }
 0x1d3   :  { %422 = vmatpush2.xpose.msra.mxu1 %v2066_v48  ;;  %v99_v48 = vld [vmem:[%s1943_s4 + $0x10] sm:$0xff] }
 0x1d4   :  { %423 = vmatprep.subr.mxu1 %v2067_v47  ;;  %v98_v47 = vld [vmem:[%s1943_s4 + $0x8] sm:$0xff] }
 0x1d7   :  { %424 = vmatpush2.xpose.msra.mxu1 %v2068_v0  ;;  %v2072_v0 = vld [vmem:[#allocation32_spill] sm:$0xff] }
 0x1d8   :  { %425 = vmatprep.subr.mxu1 %v2069_v52  ;;  %v107_v52 = vld [vmem:[%s1942_s3 + $0x8] sm:$0xff]  ;;  %v103_v56 = vmul.f32 %v2072_v0, %v98_v47  ;;  %v104_v60 = vmul.f32 %v2072_v0, %v99_v48  ;;  %v112_v59 = vmul.f32 %v108_v62, %v2072_v0  ;;  %v105_v63 = vmul.f32 %v2072_v0, %v100_v58  ;;  %v2075_v48 = vld [vmem:[#allocation29_spill] sm:$0xff] }
 0x1d9   :  { %v111_v54 = vmul.f32 %v107_v52, %v2072_v0 }
 0x1da   :  { %v116_v53 = vadd.f32 %v112_v59, %v104_v60  ;;  %v2079_v60 = vld [vmem:[#allocation31_spill] sm:$0xff] }
 0x1db   :  { %426 = vmatpush2.xpose.msra.mxu1 %v2070_v21  ;;  %v102_v21 = vmul.f32 %v2072_v0, %v97_v51  ;;  %v109_v51 = vld [vmem:[%s1942_s3 + $0x18] sm:$0xff]  ;;  %v115_v47 = vadd.f32 %v111_v54, %v103_v56  ;;  %v2077_v56 = vld [vmem:[#allocation4_spill] sm:$0xff]  ;;  %s134_s3 = smul.f32 0.5, %s828_s0 }
 0x1dc   :  { %686 = vmatprep.subr.mxu1 %v2071_v61  ;;  %v110_v61 = vmul.f32 %v106_v55, %v2072_v0  ;;  %v113_v57 = vmul.f32 %v109_v51, %v2072_v0  ;;  %v825_v45 = vadd.f32 -1.0, %v116_v53 }
 0x1dd   :  { %v824_v49 = vadd.f32 -1.0, %v115_v47 }
 0x1de   :  { %v114_v55 = vadd.f32 %v110_v61, %v102_v21  ;;  %v117_v50 = vadd.f32 %v113_v57, %v105_v63  ;;  %v1633_v59 = vmul.f32 %v825_v45, %v825_v45 }
 0x1df   :  { %v1628_v54 = vmul.f32 %v824_v49, %v824_v49 }
 0x1e0   :  { %v823_v52 = vadd.f32 -1.0, %v114_v55  ;;  %v826_v44 = vadd.f32 -1.0, %v117_v50  ;;  %2078 = vst [vmem:[#allocation4_spill] sm:$0xff] %v1633_v59 }
 0x1e1   :  { %2076 = vst [vmem:[#allocation29_spill] sm:$0xff] %v1628_v54 }
 0x1e2   :  { %v1624_v61 = vmul.f32 %v823_v52, %v823_v52  ;;  %v1636_v43 = vmul.f32 %v826_v44, %v826_v44 }
 0x1e4   :  { %2074 = vst [vmem:[#allocation32_spill] sm:$0xff] %v1624_v61  ;;  %2080 = vst [vmem:[#allocation31_spill] sm:$0xff] %v1636_v43 }
 0x21e   :  { %v298_v21 = vpop.f32.mrf.mxu1 }
 0x21f   :  { %v309_v62 = vmul.f32 %v298_v21, %v2075_v48 }
 0x220   :  { %v300_v58 = vpop.f32.mrf.mxu1 }
 0x221   :  { %v314_v0 = vmul.f32 %v1622_v46, %v309_v62  ;;  %v310_v51 = vmul.f32 %v300_v58, %v2077_v56  ;;  %v2081_v62 = vld [vmem:[#allocation30_spill] sm:$0xff] }
 0x222   :  { %v304_v55 = vpop.f32.mrf.mxu1 }
 0x223   :  { %v318_v57 = vadd.f32 %v314_v0, %v1624_v61  ;;  %v315_v63 = vmul.f32 %v1622_v46, %v310_v51  ;;  %v311_v47 = vmul.f32 %v304_v55, %v2079_v60 }
 0x224   :  { %v306_v53 = vpop.f32.mrf.mxu1 }
 0x225   :  { %v322_v21 = vmax.f32 %v318_v57, 0.0  ;;  %v319_v50 = vadd.f32 %v315_v63, %v1628_v54  ;;  %v316_v48 = vmul.f32 %v1622_v46, %v311_v47  ;;  %v312_v42 = vmul.f32 %v306_v53, %v2081_v62 }
 0x226   :  { %v1644_v54 = vsub.f32 0.0, %v823_v52  ;;  %v1646_v53 = vsub.f32 0.0, %v824_v49 }
 0x227   :  { %839 = vrsqrt.f32 %v322_v21  ;;  %v323_v58 = vmax.f32 %v319_v50, 0.0  ;;  %v320_v0 = vadd.f32 %v316_v48, %v1633_v59  ;;  %v317_v56 = vmul.f32 %v1622_v46, %v312_v42 }
 0x228   :  { %vm328_vm0 = vcmp.eq.f32.partialorder %v322_v21, inf  ;;  %v331_v50 = vand.u32 2147483648, %v322_v21  ;;  %v1648_v48 = vstv %s134_s3  ;;  %vm330_vm1 = vcmp.eq.f32.partialorder %v322_v21, 0.0 }
 0x229   :  { %841 = vrsqrt.f32 %v323_v58  ;;  %v324_v51 = vmax.f32 %v320_v0, 0.0  ;;  %v321_v55 = vadd.f32 %v317_v56, %v1636_v43  ;;  %vm335_vm2 = vcmp.eq.f32.partialorder %v323_v58, inf }
 0x22a   :  { %v338_v56 = vand.u32 2147483648, %v323_v58  ;;  %v1650_v43 = vsub.f32 0.0, %v825_v45  ;;  %vm337_vm3 = vcmp.eq.f32.partialorder %v323_v58, 0.0 }
 0x22b   :  { %843 = vrsqrt.f32 %v324_v51  ;;  %v325_v60 = vmax.f32 %v321_v55, 0.0  ;;  %vm342_vm4 = vcmp.eq.f32.partialorder %v324_v51, inf  ;;  %v345_v41 = vand.u32 2147483648, %v324_v51 }
 0x22c   :  { %vm344_vm5 = vcmp.eq.f32.partialorder %v324_v51, 0.0 }
 0x22d   :  { %845 = vrsqrt.f32 %v325_v60  ;;  %vm349_vm6 = vcmp.eq.f32.partialorder %v325_v60, inf  ;;  %vm351_vm7 = vcmp.eq.f32.partialorder %v325_v60, 0.0 }
 0x234   :  { %v840_v57 = vpop.eup %839 }
 0x235   :  { %v327_v63 = vmul.f32 %v840_v57, %v322_v21  ;;  %v1652_v57 = vsub.f32 0.0, %v826_v44 }
 0x236   :  { %v842_v47 = vpop.eup %841 }
 0x237   :  { %v334_v42 = vmul.f32 %v842_v47, %v323_v58  ;;  %v329_v62 = vsel %vm328_vm0, %v322_v21, %v327_v63 }
 0x238   :  { %v844_v0 = vpop.eup %843  ;;  %v332_v55 = vsel %vm330_vm1, %v331_v50, %v329_v62  ;;  %v352_v50 = vand.u32 2147483648, %v325_v60 }
 0x239   :  { %v336_v59 = vsel %vm335_vm2, %v323_v58, %v334_v42  ;;  %v341_v52 = vmul.f32 %v844_v0, %v324_v51  ;;  %v354_v46 = vadd.f32 %v332_v55, %v1644_v54 }
 0x23a   :  { %v846_v49 = vpop.eup %845  ;;  %v339_v61 = vsel %vm337_vm3, %v338_v56, %v336_v59 }
 0x23b   :  { %v355_v63 = vadd.f32 %v339_v61, %v1646_v53  ;;  %v348_v21 = vmul.f32 %v846_v49, %v325_v60  ;;  %v343_v47 = vsel %vm342_vm4, %v324_v51, %v341_v52  ;;  %v1660_v58 = vmul.f32 %v1648_v48, %v354_v46 }
 0x23c   :  { %v346_v45 = vsel %vm344_vm5, %v345_v41, %v343_v47  ;;  %v2107_v47 = vld [vmem:[#allocation34_spill] sm:$0xff] }
 0x23d   :  { %v1657_v42 = vmul.f32 %v1648_v48, %v355_v63  ;;  %v350_v44 = vsel %vm349_vm6, %v325_v60, %v348_v21  ;;  %v356_v62 = vadd.f32 %v346_v45, %v1650_v43  ;;  %v2106_v63 = vld [vmem:[#allocation33_spill] sm:$0xff] }
 0x23e   :  { %v353_v59 = vsel %vm351_vm7, %v352_v50, %v350_v44 }
 0x23f   :  { %427 = vmatprep.mubr.f32.mxu1 %v1657_v42  ;;  %v357_v61 = vadd.f32 %v353_v59, %v1652_v57  ;;  %v1671_v41 = vmul.f32 %v1648_v48, %v356_v62  ;;  %v2108_v59 = vld [vmem:[#allocation35_spill] sm:$0xff] }
 0x240   :  { %428 = vmatmul.mubr.f32.vlgmr.msra.gmra.mxu1 %v1660_v58 }
 0x241   :  { %v1667_v51 = vmul.f32 %v1648_v48, %v357_v61  ;;  %687 = vmatpush1.msra.mxu1 %v963_v1  ;;  %v2082_v1 = vld [vmem:[#allocation5_spill] sm:$0xff] }
 0x242   :  { %688 = vmatprep.subr.mxu1 %v968_v2  ;;  %v2083_v2 = vld [vmem:[#allocation6_spill] sm:$0xff]  ;;  %v879_v61 = vld [vmem:[%s1938_s5 + $0xf0] sm:$0xff] }
 0x243   :  { %433 = vmatprep.mubr.f32.mxu1 %v1667_v51  ;;  %689 = vmatpush1.msra.mxu1 %v978_v3  ;;  %v2084_v3 = vld [vmem:[#allocation7_spill] sm:$0xff] }
 0x244   :  { %434 = vmatmul.mubr.f32.gmra.mxu1 %v1671_v41  ;;  %690 = vmatprep.subr.mxu1 %v984_v4  ;;  %v2085_v4 = vld [vmem:[#allocation8_spill] sm:$0xff] }
 0x245   :  { %691 = vmatpush1.msra.mxu1 %v990_v5  ;;  %v2086_v5 = vld [vmem:[#allocation9_spill] sm:$0xff] }
 0x246   :  { %692 = vmatprep.subr.mxu1 %v997_v6  ;;  %v2087_v6 = vld [vmem:[#allocation10_spill] sm:$0xff] }
 0x247   :  { %693 = vmatpush1.msra.mxu1 %v1004_v7  ;;  %v2088_v7 = vld [vmem:[#allocation11_spill] sm:$0xff] }
 0x248   :  { %694 = vmatprep.subr.mxu1 %v1010_v8  ;;  %v2089_v8 = vld [vmem:[#allocation12_spill] sm:$0xff] }
 0x249   :  { %695 = vmatpush1.msra.mxu1 %v1016_v9  ;;  %v2090_v9 = vld [vmem:[#allocation13_spill] sm:$0xff] }
 0x24a   :  { %696 = vmatprep.subr.mxu1 %v1023_v10  ;;  %v2091_v10 = vld [vmem:[#allocation14_spill] sm:$0xff] }
 0x24b   :  { %697 = vmatpush1.msra.mxu1 %v1030_v11  ;;  %v2092_v11 = vld [vmem:[#allocation15_spill] sm:$0xff] }
 0x24c   :  { %698 = vmatprep.subr.mxu1 %v1036_v12  ;;  %v2093_v12 = vld [vmem:[#allocation16_spill] sm:$0xff] }
 0x24d   :  { %699 = vmatpush1.msra.mxu1 %v1042_v13  ;;  %v2094_v13 = vld [vmem:[#allocation17_spill] sm:$0xff] }
 0x24e   :  { %700 = vmatprep.subr.mxu1 %v1049_v14  ;;  %v2095_v14 = vld [vmem:[#allocation18_spill] sm:$0xff] }
 0x24f   :  { %701 = vmatpush1.msra.mxu1 %v1056_v15  ;;  %v2096_v15 = vld [vmem:[#allocation19_spill] sm:$0xff] }
 0x250   :  { %702 = vmatprep.subr.mxu1 %v1062_v16  ;;  %v2097_v16 = vld [vmem:[#allocation20_spill] sm:$0xff] }
 0x251   :  { %703 = vmatpush1.msra.mxu1 %v1068_v17  ;;  %v2098_v17 = vld [vmem:[#allocation21_spill] sm:$0xff] }
 0x252   :  { %704 = vmatprep.subr.mxu1 %v1075_v18  ;;  %v2099_v18 = vld [vmem:[#allocation22_spill] sm:$0xff] }
 0x253   :  { %705 = vmatpush1.msra.mxu1 %v1082_v19  ;;  %v2100_v19 = vld [vmem:[#allocation23_spill] sm:$0xff] }
 0x254   :  { %706 = vmatprep.subr.mxu1 %v1088_v20  ;;  %v2101_v20 = vld [vmem:[#allocation24_spill] sm:$0xff] }
 0x255   :  { %707 = vmatpush1.msra.mxu1 %v1101_v22  ;;  %v2102_v22 = vld [vmem:[#allocation25_spill] sm:$0xff] }
 0x256   :  { %708 = vmatprep.subr.mxu1 %v1108_v23  ;;  %v2103_v23 = vld [vmem:[#allocation26_spill] sm:$0xff] }
 0x257   :  { %709 = vmatpush1.msra.mxu1 %v1114_v24  ;;  %v2104_v24 = vld [vmem:[#allocation27_spill] sm:$0xff] }
 0x258   :  { %710 = vmatprep.subr.mxu1 %v1120_v25  ;;  %v2105_v25 = vld [vmem:[#allocation28_spill] sm:$0xff] }
 0x259   :  { %711 = vmatpush1.msra.mxu1 %v1127_v26 }
 0x25a   :  { %712 = vmatprep.subr.mxu1 %v1134_v27 }
 0x25b   :  { %713 = vmatpush1.msra.mxu1 %v1140_v28 }
 0x25c   :  { %714 = vmatprep.subr.mxu1 %v1146_v29 }
 0x25d   :  { %715 = vmatpush1.msra.mxu1 %v1153_v30 }
 0x25e   :  { %716 = vmatprep.subr.mxu1 %v1160_v31 }
 0x25f   :  { %717 = vmatpush1.msra.mxu1 %v1166_v32 }
 0x260   :  { %718 = vmatprep.subr.mxu1 %v1172_v33 }
 0x261   :  { %719 = vmatpush2.msra.mxu1 %v1179_v34 }
 0x262   :  { %720 = vmatprep.subr.mxu1 %v1186_v35 }
 0x263   :  { %721 = vmatpush2.msra.mxu1 %v1192_v36 }
 0x264   :  { %722 = vmatprep.subr.mxu1 %v1198_v37 }
 0x265   :  { %723 = vmatpush2.msra.mxu1 %v1205_v38 }
 0x266   :  { %724 = vmatprep.subr.mxu1 %v1212_v39 }
 0x267   :  { %725 = vmatpush2.msra.mxu1 %v1218_v40 }
 0x268   :  { %726 = vmatprep.subr.mxu1 %v2082_v1  ;;  %v2109_v1 = vld [vmem:[#allocation36_spill] sm:$0xff] }
 0x269   :  { %727 = vmatpush2.msra.mxu1 %v2083_v2 }
 0x26a   :  { %728 = vmatprep.subr.mxu1 %v2084_v3 }
 0x26b   :  { %729 = vmatpush2.msra.mxu1 %v2085_v4 }
 0x26c   :  { %730 = vmatprep.subr.mxu1 %v2086_v5 }
 0x26d   :  { %731 = vmatpush2.msra.mxu1 %v2087_v6 }
 0x26e   :  { %732 = vmatprep.subr.mxu1 %v2088_v7 }
 0x26f   :  { %733 = vmatpush2.msra.mxu1 %v2089_v8 }
 0x270   :  { %734 = vmatprep.subr.mxu1 %v2090_v9 }
 0x271   :  { %735 = vmatpush2.msra.mxu1 %v2091_v10 }
 0x272   :  { %736 = vmatprep.subr.mxu1 %v2092_v11 }
 0x273   :  { %737 = vmatpush2.msra.mxu1 %v2093_v12 }
 0x274   :  { %738 = vmatprep.subr.mxu1 %v2094_v13 }
 0x275   :  { %739 = vmatpush2.msra.mxu1 %v2095_v14 }
 0x276   :  { %740 = vmatprep.subr.mxu1 %v2096_v15 }
 0x277   :  { %741 = vmatpush2.msra.mxu1 %v2097_v16 }
 0x278   :  { %742 = vmatprep.subr.mxu1 %v2098_v17 }
 0x279   :  { %743 = vmatpush2.msra.mxu1 %v2099_v18 }
 0x27a   :  { %744 = vmatprep.subr.mxu1 %v2100_v19 }
 0x27b   :  { %745 = vmatpush2.msra.mxu1 %v2101_v20 }
 0x27c   :  { %746 = vmatprep.subr.mxu1 %v2102_v22 }
 0x27d   :  { %747 = vmatpush2.msra.mxu1 %v2103_v23 }
 0x27e   :  { %748 = vmatprep.subr.mxu1 %v2104_v24 }
 0x27f   :  { %749 = vmatpush2.msra.mxu1 %v2105_v25 }
 0x300   :  { %v429_v26 = vpop.f32.mrf.mxu1 }
 0x301   :  { %v430_v27 = vadd.f32 1e-09, %v429_v26  ;;  %v880_v26 = vld [vmem:[%s1938_s5 + $0xe8] sm:$0xff] }
 0x302   :  { %v431_v28 = vpop.f32.mrf.mxu1 }
 0x303   :  { %847 = vrcp.f32 %v430_v27  ;;  %v432_v29 = vadd.f32 1e-09, %v431_v28  ;;  %v882_v28 = vld [vmem:[%s1938_s5 + $0xd8] sm:$0xff] }
 0x304   :  { %v435_v30 = vpop.f32.mrf.mxu1 }
 0x305   :  { %849 = vrcp.f32 %v432_v29  ;;  %v436_v31 = vadd.f32 1e-09, %v435_v30  ;;  %v884_v30 = vld [vmem:[%s1938_s5 + $0xc8] sm:$0xff] }
 0x306   :  { %v437_v32 = vpop.f32.mrf.mxu1 }
 0x307   :  { %851 = vrcp.f32 %v436_v31  ;;  %v438_v33 = vadd.f32 1e-09, %v437_v32  ;;  %v886_v32 = vld [vmem:[%s1938_s5 + $0xb8] sm:$0xff] }
 0x309   :  { %853 = vrcp.f32 %v438_v33 }
 0x310   :  { %v848_v34 = vpop.eup %847 }
 0x311   :  { %v444_v35 = vmul.f32 %v848_v34, %v430_v27  ;;  %v881_v27 = vld [vmem:[%s1938_s5 + $0xe0] sm:$0xff] }
 0x312   :  { %v850_v36 = vpop.eup %849 }
 0x313   :  { %v448_v37 = vsub.f32 2.0, %v444_v35  ;;  %v445_v38 = vmul.f32 %v850_v36, %v432_v29  ;;  %v883_v29 = vld [vmem:[%s1938_s5 + $0xd0] sm:$0xff]  ;;  %v889_v35 = vld [vmem:[%s1938_s5 + $0xa0] sm:$0xff] }
 0x314   :  { %v852_v39 = vpop.eup %851 }
 0x315   :  { %v449_v40 = vsub.f32 2.0, %v445_v38  ;;  %v446_v46 = vmul.f32 %v852_v39, %v436_v31  ;;  %v452_v0 = vmul.f32 %v848_v34, %v448_v37  ;;  %v885_v31 = vld [vmem:[%s1938_s5 + $0xc0] sm:$0xff]  ;;  %v888_v34 = vld [vmem:[%s1938_s5 + $0xa8] sm:$0xff]  ;;  %v891_v37 = vld [vmem:[%s1938_s5 + $0x90] sm:$0xff] }
 0x316   :  { %v854_v60 = vpop.eup %853  ;;  %v892_v38 = vld [vmem:[%s1938_s5 + $0x88] sm:$0xff] }
 0x317   :  { %v453_v56 = vmul.f32 %v850_v36, %v449_v40  ;;  %v450_v55 = vsub.f32 2.0, %v446_v46  ;;  %v447_v52 = vmul.f32 %v854_v60, %v438_v33  ;;  %v456_v50 = vmul.f32 %v452_v0, %v2107_v47  ;;  %v887_v33 = vld [vmem:[%s1938_s5 + $0xb0] sm:$0xff]  ;;  %v890_v36 = vld [vmem:[%s1938_s5 + $0x98] sm:$0xff]  ;;  %v897_v0 = vld [vmem:[%s1938_s5 + $0x60] sm:$0xff] }
 0x318   :  { %v894_v40 = vld [vmem:[%s1938_s5 + $0x78] sm:$0xff]  ;;  %v895_v46 = vld [vmem:[%s1938_s5 + $0x70] sm:$0xff] }
 0x319   :  { %v451_v49 = vsub.f32 2.0, %v447_v52  ;;  %v457_v21 = vmul.f32 %v453_v56, %v2106_v63  ;;  %v454_v45 = vmul.f32 %v852_v39, %v450_v55  ;;  %v893_v39 = vld [vmem:[%s1938_s5 + $0x80] sm:$0xff]  ;;  %v898_v56 = vld [vmem:[%s1938_s5 + $0x58] sm:$0xff]  ;;  %v899_v55 = vld [vmem:[%s1938_s5 + $0x50] sm:$0xff] }
 0x31a   :  { %v900_v52 = vld [vmem:[%s1938_s5 + $0x48] sm:$0xff] }
 0x31b   :  { %v455_v44 = vmul.f32 %v854_v60, %v451_v49  ;;  %524 = vmatprep.mubr.f32.mxu0 %v457_v21  ;;  %v458_v2 = vmul.f32 %v454_v45, %v2109_v1  ;;  %v896_v60 = vld [vmem:[%s1938_s5 + $0x68] sm:$0xff]  ;;  %v901_v49 = vld [vmem:[%s1938_s5 + $0x40] sm:$0xff]  ;;  %v902_v21 = vld [vmem:[%s1938_s5 + $0x38] sm:$0xff] }
 0x31c   :  { %525 = vmatmul.mubr.f32.vlgmr.msra.gmra.mxu0 %v456_v50  ;;  %v903_v50 = vld [vmem:[%s1938_s5 + $0x30] sm:$0xff]  ;;  %v904_v45 = vld [vmem:[%s1938_s5 + $0x28] sm:$0xff] }
 0x31d   :  { %v459_v62 = vmul.f32 %v455_v44, %v2108_v59  ;;  %590 = vmatpush1.xpose.msra.mxu0 %v879_v61  ;;  %v905_v44 = vld [vmem:[%s1938_s5 + $0x20] sm:$0xff]  ;;  %v907_v61 = vld [vmem:[%s1938_s5 + $0x10] sm:$0xff] }
 0x31e   :  { %591 = vmatprep.subr.mxu0 %v880_v26  ;;  %v909_v26 = vld [vmem:[%s1938_s5] sm:$0xff] }
 0x31f   :  { %530 = vmatprep.mubr.f32.mxu0 %v459_v62  ;;  %v906_v62 = vld [vmem:[%s1938_s5 + $0x18] sm:$0xff] }
 0x320   :  { %531 = vmatmul.mubr.f32.gmra.mxu0 %v458_v2  ;;  %v908_v2 = vld [vmem:[%s1938_s5 + $0x8] sm:$0xff] }
 0x321   :  { %592 = vmatpush1.xpose.msra.mxu0 %v881_v27  ;;  %v910_v27 = vld [vmem:[%s1938_s5 + $0x1f8] sm:$0xff] }
 0x322   :  { %593 = vmatprep.subr.mxu0 %v882_v28  ;;  %v911_v28 = vld [vmem:[%s1938_s5 + $0x1f0] sm:$0xff] }
 0x325   :  { %594 = vmatpush1.xpose.msra.mxu0 %v883_v29  ;;  %v912_v29 = vld [vmem:[%s1938_s5 + $0x1e8] sm:$0xff] }
 0x326   :  { %595 = vmatprep.subr.mxu0 %v884_v30  ;;  %v913_v30 = vld [vmem:[%s1938_s5 + $0x1e0] sm:$0xff] }
 0x329   :  { %596 = vmatpush1.xpose.msra.mxu0 %v885_v31  ;;  %v914_v31 = vld [vmem:[%s1938_s5 + $0x1d8] sm:$0xff] }
 0x32a   :  { %597 = vmatprep.subr.mxu0 %v886_v32  ;;  %v915_v32 = vld [vmem:[%s1938_s5 + $0x1d0] sm:$0xff] }
 0x32d   :  { %598 = vmatpush1.xpose.msra.mxu0 %v887_v33  ;;  %v916_v33 = vld [vmem:[%s1938_s5 + $0x1c8] sm:$0xff] }
 0x32e   :  { %599 = vmatprep.subr.mxu0 %v888_v34  ;;  %v917_v34 = vld [vmem:[%s1938_s5 + $0x1c0] sm:$0xff] }
 0x331   :  { %600 = vmatpush1.xpose.msra.mxu0 %v889_v35  ;;  %v918_v35 = vld [vmem:[%s1938_s5 + $0x1b8] sm:$0xff] }
 0x332   :  { %601 = vmatprep.subr.mxu0 %v890_v36  ;;  %v919_v36 = vld [vmem:[%s1938_s5 + $0x1b0] sm:$0xff] }
 0x335   :  { %602 = vmatpush1.xpose.msra.mxu0 %v891_v37 }
 0x336   :  { %603 = vmatprep.subr.mxu0 %v892_v38 }
 0x339   :  { %604 = vmatpush1.xpose.msra.mxu0 %v893_v39 }
 0x33a   :  { %605 = vmatprep.subr.mxu0 %v894_v40 }
 0x33d   :  { %606 = vmatpush1.xpose.msra.mxu0 %v895_v46 }
 0x33e   :  { %607 = vmatprep.subr.mxu0 %v896_v60 }
 0x341   :  { %608 = vmatpush1.xpose.msra.mxu0 %v897_v0 }
 0x342   :  { %609 = vmatprep.subr.mxu0 %v898_v56 }
 0x345   :  { %610 = vmatpush1.xpose.msra.mxu0 %v899_v55 }
 0x346   :  { %611 = vmatprep.subr.mxu0 %v900_v52 }
 0x349   :  { %612 = vmatpush1.xpose.msra.mxu0 %v901_v49 }
 0x34a   :  { %613 = vmatprep.subr.mxu0 %v902_v21 }
 0x34d   :  { %614 = vmatpush1.xpose.msra.mxu0 %v903_v50 }
 0x34e   :  { %615 = vmatprep.subr.mxu0 %v904_v45 }
 0x351   :  { %616 = vmatpush1.xpose.msra.mxu0 %v905_v44 }
 0x352   :  { %617 = vmatprep.subr.mxu0 %v906_v62 }
 0x355   :  { %618 = vmatpush1.xpose.msra.mxu0 %v907_v61 }
 0x356   :  { %619 = vmatprep.subr.mxu0 %v908_v2 }
 0x359   :  { %620 = vmatpush1.xpose.msra.mxu0 %v909_v26 }
 0x35a   :  { %621 = vmatprep.subr.mxu0 %v910_v27 }
 0x35d   :  { %622 = vmatpush2.xpose.msra.mxu0 %v911_v28 }
 0x35e   :  { %623 = vmatprep.subr.mxu0 %v912_v29 }
 0x361   :  { %624 = vmatpush2.xpose.msra.mxu0 %v913_v30 }
 0x362   :  { %625 = vmatprep.subr.mxu0 %v914_v31 }
 0x365   :  { %626 = vmatpush2.xpose.msra.mxu0 %v915_v32 }
 0x366   :  { %627 = vmatprep.subr.mxu0 %v916_v33 }
 0x369   :  { %628 = vmatpush2.xpose.msra.mxu0 %v917_v34 }
 0x36a   :  { %629 = vmatprep.subr.mxu0 %v918_v35 }
 0x36d   :  { %630 = vmatpush2.xpose.msra.mxu0 %v919_v36 }
 0x36e   :  { %631 = vmatprep.subr.mxu0 %v2084_v3 }
 0x371   :  { %632 = vmatpush2.xpose.msra.mxu0 %v2085_v4 }
 0x372   :  { %633 = vmatprep.subr.mxu0 %v2086_v5 }
 0x375   :  { %634 = vmatpush2.xpose.msra.mxu0 %v2087_v6  ;;  %v2110_v6 = vld [vmem:[#allocation3_spill] sm:$0xff] }
 0x376   :  { %635 = vmatprep.subr.mxu0 %v2088_v7 }
 0x379   :  { %636 = vmatpush2.xpose.msra.mxu0 %v2089_v8 }
 0x37a   :  { %637 = vmatprep.subr.mxu0 %v2090_v9 }
 0x37d   :  { %638 = vmatpush2.xpose.msra.mxu0 %v2091_v10  ;;  %v2111_v10 = vld [vmem:[#allocation32_spill] sm:$0xff] }
 0x37e   :  { %639 = vmatprep.subr.mxu0 %v2092_v11 }
 0x381   :  { %640 = vmatpush2.xpose.msra.mxu0 %v2093_v12 }
 0x382   :  { %641 = vmatprep.subr.mxu0 %v2094_v13 }
 0x385   :  { %642 = vmatpush2.xpose.msra.mxu0 %v2095_v14 }
 0x386   :  { %643 = vmatprep.subr.mxu0 %v2096_v15 }
 0x389   :  { %644 = vmatpush2.xpose.msra.mxu0 %v2097_v16  ;;  %v2112_v16 = vld [vmem:[#allocation29_spill] sm:$0xff] }
 0x38a   :  { %645 = vmatprep.subr.mxu0 %v2098_v17 }
 0x38d   :  { %646 = vmatpush2.xpose.msra.mxu0 %v2099_v18 }
 0x38e   :  { %647 = vmatprep.subr.mxu0 %v2100_v19 }
 0x391   :  { %648 = vmatpush2.xpose.msra.mxu0 %v2101_v20  ;;  %v2113_v20 = vld [vmem:[#allocation4_spill] sm:$0xff] }
 0x392   :  { %649 = vmatprep.subr.mxu0 %v2102_v22 }
 0x395   :  { %650 = vmatpush2.xpose.msra.mxu0 %v2103_v23 }
 0x396   :  { %651 = vmatprep.subr.mxu0 %v2104_v24  ;;  %v2114_v24 = vld [vmem:[#allocation31_spill] sm:$0xff] }
 0x399   :  { %652 = vmatpush2.xpose.msra.mxu0 %v2105_v25 }
 0x3dc   :  { %v526_v3 = vpop.f32.mrf.mxu0 }
 0x3dd   :  { %v537_v4 = vmul.f32 %v526_v3, %v1660_v58 }
 0x3de   :  { %v528_v5 = vpop.f32.mrf.mxu0 }
 0x3df   :  { %v541_v7 = vmul.f32 %v537_v4, %v2110_v6  ;;  %v538_v8 = vmul.f32 %v528_v5, %v1657_v42 }
 0x3e0   :  { %v532_v9 = vpop.f32.mrf.mxu0 }
 0x3e1   :  { %v545_v11 = vadd.f32 %v541_v7, %v2111_v10  ;;  %v542_v12 = vmul.f32 %v538_v8, %v2110_v6  ;;  %v539_v13 = vmul.f32 %v532_v9, %v1671_v41 }
 0x3e2   :  { %v534_v14 = vpop.f32.mrf.mxu0 }
 0x3e3   :  { %v549_v15 = vmax.f32 %v545_v11, 0.0  ;;  %v546_v17 = vadd.f32 %v542_v12, %v2112_v16  ;;  %v543_v18 = vmul.f32 %v539_v13, %v2110_v6  ;;  %v540_v58 = vmul.f32 %v534_v14, %v1667_v51 }
 0x3e5   :  { %855 = vrsqrt.f32 %v549_v15  ;;  %v550_v19 = vmax.f32 %v546_v17, 0.0  ;;  %v547_v22 = vadd.f32 %v543_v18, %v2113_v20  ;;  %v544_v42 = vmul.f32 %v540_v58, %v2110_v6 }
 0x3e6   :  { %vm555_vm8 = vcmp.eq.f32.partialorder %v549_v15, inf  ;;  %v558_v40 = vand.u32 2147483648, %v549_v15  ;;  %vm557_vm9 = vcmp.eq.f32.partialorder %v549_v15, 0.0 }
 0x3e7   :  { %857 = vrsqrt.f32 %v550_v19  ;;  %v551_v23 = vmax.f32 %v547_v22, 0.0  ;;  %v548_v25 = vadd.f32 %v544_v42, %v2114_v24  ;;  %vm562_vm10 = vcmp.eq.f32.partialorder %v550_v19, inf }
 0x3e8   :  { %v565_v0 = vand.u32 2147483648, %v550_v19  ;;  %vm564_vm11 = vcmp.eq.f32.partialorder %v550_v19, 0.0 }
 0x3e9   :  { %859 = vrsqrt.f32 %v551_v23  ;;  %v552_v41 = vmax.f32 %v548_v25, 0.0  ;;  %vm569_vm12 = vcmp.eq.f32.partialorder %v551_v23, inf  ;;  %v572_v45 = vand.u32 2147483648, %v551_v23 }
 0x3ea   :  { %vm571_vm13 = vcmp.eq.f32.partialorder %v551_v23, 0.0 }
 0x3eb   :  { %861 = vrsqrt.f32 %v552_v41  ;;  %vm576_vm14 = vcmp.eq.f32.partialorder %v552_v41, inf  ;;  %v579_v2 = vand.u32 2147483648, %v552_v41  ;;  %vm578_vm15 = vcmp.eq.f32.partialorder %v552_v41, 0.0 }
 0x3f2   :  { %v856_v37 = vpop.eup %855 }
 0x3f3   :  { %v554_v38 = vmul.f32 %v856_v37, %v549_v15 }
 0x3f4   :  { %v858_v39 = vpop.eup %857 }
 0x3f5   :  { %v561_v46 = vmul.f32 %v858_v39, %v550_v19  ;;  %v556_v51 = vsel %vm555_vm8, %v549_v15, %v554_v38 }
 0x3f6   :  { %v860_v60 = vpop.eup %859  ;;  %v559_v56 = vsel %vm557_vm9, %v558_v40, %v556_v51 }
 0x3f7   :  { %v563_v55 = vsel %vm562_vm10, %v550_v19, %v561_v46  ;;  %v568_v52 = vmul.f32 %v860_v60, %v551_v23  ;;  %v581_v50 = vadd.f32 %v559_v56, %v1644_v54 }
 0x3f8   :  { %v862_v49 = vpop.eup %861  ;;  %v566_v21 = vsel %vm564_vm11, %v565_v0, %v563_v55 }
 0x3f9   :  { %v582_v44 = vadd.f32 %v566_v21, %v1646_v53  ;;  %v575_v62 = vmul.f32 %v862_v49, %v552_v41  ;;  %v570_v61 = vsel %vm569_vm12, %v551_v23, %v568_v52  ;;  %v585_v29 = vmul.f32 %v581_v50, %v1648_v48 }
 0x3fa   :  { %v573_v26 = vsel %vm571_vm13, %v572_v45, %v570_v61 }
 0x3fb   :  { %v586_v27 = vmul.f32 %v582_v44, %v1648_v48  ;;  %v577_v28 = vsel %vm576_vm14, %v552_v41, %v575_v62  ;;  %v583_v31 = vadd.f32 %v573_v26, %v1650_v43 }
 0x3fc   :  { %v580_v30 = vsel %vm578_vm15, %v579_v2, %v577_v28 }
 0x3fd   :  { %653 = vmatprep.mubr.f32.mxu0 %v586_v27  ;;  %v584_v32 = vadd.f32 %v580_v30, %v1652_v57  ;;  %v587_v34 = vmul.f32 %v583_v31, %v1648_v48 }
 0x3fe   :  { %654 = vmatmul.mubr.f32.vlgmr.msra.gmra.mxu0 %v585_v29 }
 0x3ff   :  { %v588_v33 = vmul.f32 %v584_v32, %v1648_v48 }
 0x401   :  { %659 = vmatprep.mubr.f32.mxu0 %v588_v33 }
 0x402   :  { %660 = vmatmul.mubr.f32.gmra.mxu0 %v587_v34 }
 0x4be   :  { %v655_v35 = vpop.f32.mrf.mxu0 }
 0x4bf   :  { %v656_v36 = vadd.f32 1e-09, %v655_v35 }
 0x4c0   :  { %v657_v3 = vpop.f32.mrf.mxu0 }
 0x4c1   :  { %863 = vrcp.f32 %v656_v36  ;;  %v658_v4 = vadd.f32 1e-09, %v657_v3 }
 0x4c2   :  { %v661_v5 = vpop.f32.mrf.mxu0 }
 0x4c3   :  { %865 = vrcp.f32 %v658_v4  ;;  %v662_v7 = vadd.f32 1e-09, %v661_v5 }
 0x4c4   :  { %v663_v8 = vpop.f32.mrf.mxu0 }
 0x4c5   :  { %867 = vrcp.f32 %v662_v7  ;;  %v664_v9 = vadd.f32 1e-09, %v663_v8 }
 0x4c7   :  { %869 = vrcp.f32 %v664_v9 }
 0x4ce   :  { %v864_v11 = vpop.eup %863 }
 0x4cf   :  { %v670_v12 = vmul.f32 %v864_v11, %v656_v36 }
 0x4d0   :  { %v866_v13 = vpop.eup %865 }
 0x4d1   :  { %v674_v14 = vsub.f32 2.0, %v670_v12  ;;  %v671_v15 = vmul.f32 %v866_v13, %v658_v4 }
 0x4d2   :  { %v868_v17 = vpop.eup %867 }
 0x4d3   :  { %v675_v18 = vsub.f32 2.0, %v671_v15  ;;  %v672_v58 = vmul.f32 %v868_v17, %v662_v7  ;;  %v678_v22 = vmul.f32 %v864_v11, %v674_v14 }
 0x4d4   :  { %v870_v19 = vpop.eup %869 }
 0x4d5   :  { %v679_v42 = vmul.f32 %v866_v13, %v675_v18  ;;  %v676_v23 = vsub.f32 2.0, %v672_v58  ;;  %v673_v25 = vmul.f32 %v870_v19, %v664_v9  ;;  %v682_v38 = vmul.f32 %v678_v22, %v2107_v47 }
 0x4d7   :  { %v677_v41 = vsub.f32 2.0, %v673_v25  ;;  %v683_v37 = vmul.f32 %v679_v42, %v2106_v63  ;;  %v680_v39 = vmul.f32 %v868_v17, %v676_v23 }
 0x4d9   :  { %v681_v40 = vmul.f32 %v870_v19, %v677_v41  ;;  %750 = vmatprep.mubr.f32.mxu1 %v683_v37  ;;  %v684_v51 = vmul.f32 %v680_v39, %v2109_v1 }
 0x4da   :  { %751 = vmatmul.mubr.f32.vlgmr.msra.gmra.mxu1 %v682_v38 }
 0x4db   :  { %v685_v46 = vmul.f32 %v681_v40, %v2108_v59 }
 0x4dd   :  { %756 = vmatprep.mubr.f32.mxu1 %v685_v46 }
 0x4de   :  { %757 = vmatmul.mubr.f32.gmra.mxu1 %v684_v51 }
 0x59a   :  { %v752_v60 = vpop.f32.mrf.mxu1 }
 0x59b   :  { %v763_v0 = vmul.f32 %v752_v60, %v585_v29 }
 0x59c   :  { %v754_v56 = vpop.f32.mrf.mxu1 }
 0x59d   :  { %v767_v55 = vmul.f32 %v763_v0, %v2110_v6  ;;  %v764_v52 = vmul.f32 %v754_v56, %v586_v27 }
 0x59e   :  { %v758_v49 = vpop.f32.mrf.mxu1 }
 0x59f   :  { %v771_v63 = vadd.f32 %v767_v55, %v2111_v10  ;;  %v768_v47 = vmul.f32 %v764_v52, %v2110_v6  ;;  %v765_v21 = vmul.f32 %v758_v49, %v587_v34 }
 0x5a0   :  { %v760_v50 = vpop.f32.mrf.mxu1 }
 0x5a1   :  { %v775_v45 = vmax.f32 %v771_v63, 0.0  ;;  %v772_v59 = vadd.f32 %v768_v47, %v2112_v16  ;;  %v769_v1 = vmul.f32 %v765_v21, %v2110_v6  ;;  %v766_v44 = vmul.f32 %v760_v50, %v588_v33 }
 0x5a3   :  { %871 = vrsqrt.f32 %v775_v45  ;;  %v776_v62 = vmax.f32 %v772_v59, 0.0  ;;  %v773_v61 = vadd.f32 %v769_v1, %v2113_v20  ;;  %v770_v2 = vmul.f32 %v766_v44, %v2110_v6 }
 0x5a4   :  { %vm781_vm0 = vcmp.eq.f32.partialorder %v775_v45, inf  ;;  %v784_v16 = vand.u32 2147483648, %v775_v45  ;;  %vm783_vm1 = vcmp.eq.f32.partialorder %v775_v45, 0.0 }
 0x5a5   :  { %873 = vrsqrt.f32 %v776_v62  ;;  %v777_v26 = vmax.f32 %v773_v61, 0.0  ;;  %v774_v10 = vadd.f32 %v770_v2, %v2114_v24  ;;  %vm788_vm2 = vcmp.eq.f32.partialorder %v776_v62, inf }
 0x5a6   :  { %v791_v6 = vand.u32 2147483648, %v776_v62  ;;  %vm790_vm3 = vcmp.eq.f32.partialorder %v776_v62, 0.0 }
 0x5a7   :  { %875 = vrsqrt.f32 %v777_v26  ;;  %v778_v27 = vmax.f32 %v774_v10, 0.0  ;;  %vm795_vm4 = vcmp.eq.f32.partialorder %v777_v26, inf  ;;  %v798_v5 = vand.u32 2147483648, %v777_v26 }
 0x5a8   :  { %vm797_vm5 = vcmp.eq.f32.partialorder %v777_v26, 0.0 }
 0x5a9   :  { %877 = vrsqrt.f32 %v778_v27  ;;  %vm802_vm6 = vcmp.eq.f32.partialorder %v778_v27, inf  ;;  %v805_v13 = vand.u32 2147483648, %v778_v27  ;;  %vm804_vm7 = vcmp.eq.f32.partialorder %v778_v27, 0.0 }
 0x5b0   :  { %v872_v28 = vpop.eup %871 }
 0x5b1   :  { %v780_v29 = vmul.f32 %v872_v28, %v775_v45 }
 0x5b2   :  { %v874_v30 = vpop.eup %873 }
 0x5b3   :  { %v782_v31 = vsel %vm781_vm0, %v775_v45, %v780_v29  ;;  %v787_v33 = vmul.f32 %v874_v30, %v776_v62 }
 0x5b4   :  { %v785_v32 = vsel %vm783_vm1, %v784_v16, %v782_v31  ;;  %v876_v34 = vpop.eup %875 }
 0x5b5   :  { %v807_v20 = vadd.f32 %v785_v32, %v1644_v54  ;;  %v789_v35 = vsel %vm788_vm2, %v776_v62, %v787_v33  ;;  %v794_v3 = vmul.f32 %v876_v34, %v777_v26 }
 0x5b6   :  { %v792_v36 = vsel %vm790_vm3, %v791_v6, %v789_v35  ;;  %v878_v7 = vpop.eup %877 }
 0x5b7   :  { %v811_v24 = vmul.f32 %v807_v20, %v1648_v48  ;;  %v808_v4 = vadd.f32 %v792_v36, %v1646_v53  ;;  %v796_v8 = vsel %vm795_vm4, %v777_v26, %v794_v3  ;;  %v801_v11 = vmul.f32 %v878_v7, %v778_v27 }
 0x5b8   :  { %v799_v9 = vsel %vm797_vm5, %v798_v5, %v796_v8 }
 0x5b9   :  { %815 = vst [vmem:[%s1944_s6] sm:$0xff] %v811_v24  ;;  %v812_v54 = vmul.f32 %v808_v4, %v1648_v48  ;;  %v809_v12 = vadd.f32 %v799_v9, %v1650_v43  ;;  %v803_v53 = vsel %vm802_vm6, %v778_v27, %v801_v11 }
 0x5ba   :  { %v806_v15 = vsel %vm804_vm7, %v805_v13, %v803_v53 }
 0x5bb   :  { %816 = vst [vmem:[%s1944_s6 + $0x8] sm:$0xff] %v812_v54  ;;  %v813_v14 = vmul.f32 %v809_v12, %v1648_v48  ;;  %v810_v17 = vadd.f32 %v806_v15, %v1652_v57 }
 0x5bd   :  { %817 = vst [vmem:[%s1944_s6 + $0x10] sm:$0xff] %v813_v14  ;;  %v814_v18 = vmul.f32 %v810_v17, %v1648_v48 }
 0x5bf   :  { %818 = vst [vmem:[%s1944_s6 + $0x18] sm:$0xff] %v814_v18 }

</bundles_post_ra>
